<compile_context>
chip_gen: v7x
topology: tpu7x:2x2x1
jax: 0.10.0
libtpu: 0.0.40
codegen_flags: <defaults>
</compile_context>

<pallas_src>
import functools
import math

import jax
import jax.numpy as jnp
from jax.experimental import pallas as pl
from jax.experimental.pallas import tpu as pltpu


# ---------------------------- Pallas kernel ----------------------------

def _sepconv_kernel(x_ref, w_ref, s_ref, b_ref, pw_ref, o_ref, *,
                    k, dilation, th, wout, cin, cout):
    """One (batch, row-block) tile: depthwise kxk + folded BN + pointwise 1x1.

    x_ref : (1, H_pad, W_pad, Cin) padded input, resident across row blocks.
    w_ref : (k*k, Cin)             depthwise taps.
    s_ref : (1, Cin)               folded BN scale.
    b_ref : (1, Cin)               folded BN bias.
    pw_ref: (Cin, Cout) bf16       pointwise weights.
    o_ref : (1, th, Wout, Cout)    output tile.
    """
    i = pl.program_id(1)
    r0 = pl.multiple_of(i * th, th)          # first output row of this tile
    xv = x_ref.at[0]                          # (H_pad, W_pad, Cin) view

    # 9 (k*k) shifted windows sliced straight from the resident VMEM block.
    prods = []
    for ky in range(k):
        for kx in range(k):
            tap = xv[pl.ds(r0 + ky * dilation, th),
                     kx * dilation: kx * dilation + wout, :]
            prods.append(tap * w_ref[ky * k + kx])

    # Balanced-tree accumulation (shorter dependency chain than a serial sum).
    while len(prods) > 1:
        nxt = [prods[j] + prods[j + 1] for j in range(0, len(prods) - 1, 2)]
        if len(prods) % 2:
            nxt.append(prods[-1])
        prods = nxt

    dw = prods[0] * s_ref[0] + b_ref[0]       # folded BatchNorm (f32, VPU)

    # Pointwise 1x1: bf16 operands, f32 accumulation on the MXU.
    lhs = dw.reshape(th * wout, cin).astype(jnp.bfloat16)
    acc = jnp.dot(lhs, pw_ref[...], preferred_element_type=jnp.float32)
    o_ref[0] = acc.reshape(th, wout, cout).astype(o_ref.dtype)


# ------------------------------ wrapper ------------------------------

def separable_conv2d(x_nchw, dw_weight, bn_gamma, bn_beta, bn_mean, bn_var,
                     pw_weight, *, stride=1, padding=1, dilation=1, eps=1e-5):
    """Forward of SeparableConv2d (eval-mode BN), NCHW in / NCHW out."""
    assert stride == 1, "TODO(synk): stride > 1 not implemented"
    N, Cin, H, W = x_nchw.shape
    k = dw_weight.shape[-1]
    Cout = pw_weight.shape[0]
    Hout = H + 2 * padding - dilation * (k - 1)
    Wout = W + 2 * padding - dilation * (k - 1)

    # Fold BN into scale/bias (f32).
    s = (bn_gamma / jnp.sqrt(bn_var + eps)).astype(jnp.float32)
    b = (bn_beta - bn_mean * s).astype(jnp.float32)

    # NHWC so channels land on the TPU lane axis.
    x = jnp.transpose(x_nchw, (0, 2, 3, 1)).astype(jnp.float32)

    # Row tiling: aim for a matmul M dim of ~1024 rows per tile.
    TH = max(1, min(Hout, max(1, 1024 // max(1, Wout))))
    n_rb = -(-Hout // TH)                     # cdiv
    Hout_pad = n_rb * TH
    H_pad = Hout_pad + dilation * (k - 1)
    W_pad = W + 2 * padding
    extra = H_pad - (H + 2 * padding)         # extra zero rows so blocks divide
    xp = jnp.pad(x, ((0, 0), (padding, padding + extra),
                     (padding, padding), (0, 0)))

    # Weights: depthwise (Cin,1,k,k) -> (k*k, Cin); pointwise -> (Cin, Cout) bf16.
    dww = dw_weight.reshape(Cin, k * k).T.astype(jnp.float32)
    pww = pw_weight.reshape(Cout, Cin).T.astype(jnp.bfloat16)
    sp = s.reshape(1, Cin)
    bp = b.reshape(1, Cin)

    # Explicit VMEM budget (double-buffered estimate), capped for v7x (64 MiB).
    est = ((H_pad * W_pad * Cin * 4) * 2
           + (TH * Wout * Cout * 4) * 2
           + (k * k * Cin * 4 + 2 * Cin * 4 + Cin * Cout * 2) * 2)
    vmem_limit = int(min(max(2 * est, 32 * 1024 * 1024), 48 * 1024 * 1024))

    kernel = functools.partial(_sepconv_kernel, k=k, dilation=dilation,
                               th=TH, wout=Wout, cin=Cin, cout=Cout)

    out = pl.pallas_call(
        kernel,
        out_shape=jax.ShapeDtypeStruct((N, Hout_pad, Wout, Cout), jnp.float32),
        grid_spec=pltpu.PrefetchScalarGridSpec(
            num_scalar_prefetch=0,
            grid=(N, n_rb),
            in_specs=[
                # padded input: constant block index across row blocks ->
                # DMA'd once per batch element, reused for every row tile.
                pl.BlockSpec((1, H_pad, W_pad, Cin), lambda n, i: (n, 0, 0, 0)),
                pl.BlockSpec((k * k, Cin), lambda n, i: (0, 0)),
                pl.BlockSpec((1, Cin), lambda n, i: (0, 0)),
                pl.BlockSpec((1, Cin), lambda n, i: (0, 0)),
                pl.BlockSpec((Cin, Cout), lambda n, i: (0, 0)),
            ],
            out_specs=pl.BlockSpec((1, TH, Wout, Cout),
                                   lambda n, i: (n, i, 0, 0)),
        ),
        compiler_params=pltpu.CompilerParams(
            dimension_semantics=("parallel", "arbitrary"),
            vmem_limit_bytes=vmem_limit),
    )(xp, dww, sp, bp, pww)

    out = out[:, :Hout]                       # drop row-padding
    return jnp.transpose(out, (0, 3, 1, 2))   # back to NCHW


# --------------------------- pure-JAX reference ---------------------------

def _reference(x, dw_w, gamma, beta, mean, var, pw_w, padding, dilation,
               eps=1e-5):
    Cin = x.shape[1]
    Cout = pw_w.shape[0]
    dw = jax.lax.conv_general_dilated(
        x, dw_w, window_strides=(1, 1),
        padding=((padding, padding), (padding, padding)),
        rhs_dilation=(dilation, dilation),
        feature_group_count=Cin,
        dimension_numbers=("NCHW", "OIHW", "NCHW"))
    s = gamma / jnp.sqrt(var + eps)
    b = beta - mean * s
    dwbn = dw * s[None, :, None, None] + b[None, :, None, None]
    lhs = jnp.transpose(dwbn, (0, 2, 3, 1)).astype(jnp.bfloat16)
    wmat = pw_w.reshape(Cout, Cin).T.astype(jnp.bfloat16)
    out = jnp.dot(lhs.reshape(-1, Cin), wmat,
                  preferred_element_type=jnp.float32)
    out = out.reshape(dwbn.shape[0], dwbn.shape[2], dwbn.shape[3], Cout)
    return jnp.transpose(out, (0, 3, 1, 2))


# ------------------------------- demo -------------------------------

if __name__ == "__main__":
    key = jax.random.PRNGKey(0)
    ks = jax.random.split(key, 7)
    N, Cin, H, W, Cout, k = 2, 32, 16, 16, 64, 3

    x = jax.random.normal(ks[0], (N, Cin, H, W), jnp.float32)
    dw_w = jax.random.normal(ks[1], (Cin, 1, k, k), jnp.float32) / 3.0
    pw_w = jax.random.normal(ks[2], (Cout, Cin, 1, 1), jnp.float32) / math.sqrt(Cin)
    gamma = 1.0 + 0.1 * jax.random.normal(ks[3], (Cin,), jnp.float32)
    beta = 0.1 * jax.random.normal(ks[4], (Cin,), jnp.float32)
    mean = 0.1 * jax.random.normal(ks[5], (Cin,), jnp.float32)
    var = jax.random.uniform(ks[6], (Cin,), jnp.float32, 0.5, 1.5)

    # default config: kernel_size=3, stride=1, padding=1, dilation=1
    fn1 = jax.jit(functools.partial(separable_conv2d, padding=1, dilation=1))
    out1 = fn1(x, dw_w, gamma, beta, mean, var, pw_w)
    jax.block_until_ready(out1)
    ref1 = _reference(x, dw_w, gamma, beta, mean, var, pw_w, 1, 1)
    assert out1.shape == (N, Cout, H, W)
    assert float(jnp.max(jnp.abs(out1 - ref1))) < 0.1

    # dilated config (as used by the JPU: padding=dilation=2)
    fn2 = jax.jit(functools.partial(separable_conv2d, padding=2, dilation=2))
    out2 = fn2(x, dw_w, gamma, beta, mean, var, pw_w)
    jax.block_until_ready(out2)
    ref2 = _reference(x, dw_w, gamma, beta, mean, var, pw_w, 2, 2)
    assert out2.shape == (N, Cout, H, W)
    assert float(jnp.max(jnp.abs(out2 - ref2))) < 0.1

    print("KERNEL_OK")
</pallas_src>

<mosaic_0001>
module attributes {stable_mosaic.version = 11 : i64} {
  func.func @_sepconv_kernel(%arg0: i32, %arg1: i32, %arg2: memref<1x18x18x32xf32, #tpu.memory_space<vmem>>, %arg3: memref<9x32xf32, #tpu.memory_space<vmem>>, %arg4: memref<1x32xf32, #tpu.memory_space<vmem>>, %arg5: memref<1x32xf32, #tpu.memory_space<vmem>>, %arg6: memref<32x64xbf16, #tpu.memory_space<vmem>>, %arg7: memref<1x16x16x64xf32, #tpu.memory_space<vmem>>) attributes {dimension_semantics = [#tpu.dimension_semantics<parallel>, #tpu.dimension_semantics<arbitrary>], iteration_bounds = array<i64: 2, 1>, scalar_prefetch = 0 : i64, scratch_operands = 0 : i64, tpu.core_type = #tpu.core_type<tc>, window_params = [{transform_indices = @transform_0, window_bounds = array<i64: 1, 18, 18, 32>}, {pipeline_mode = #tpu.pipeline_mode<synchronous>, transform_indices = @transform_1, window_bounds = array<i64: 9, 32>}, {pipeline_mode = #tpu.pipeline_mode<synchronous>, transform_indices = @transform_2, window_bounds = array<i64: 1, 32>}, {pipeline_mode = #tpu.pipeline_mode<synchronous>, transform_indices = @transform_3, window_bounds = array<i64: 1, 32>}, {pipeline_mode = #tpu.pipeline_mode<synchronous>, transform_indices = @transform_4, window_bounds = array<i64: 32, 64>}, {transform_indices = @transform_5, window_bounds = array<i64: 1, 16, 16, 64>}]} {
    %c16_i32 = arith.constant 16 : i32
    %0 = arith.muli %arg1, %c16_i32 : i32
    %1 = tpu.assume_multiple %0, 16 : i32
    %c0_i32 = arith.constant 0 : i32
    %2 = arith.addi %1, %c0_i32 : i32
    %c0_i32_0 = arith.constant 0 : i32
    %c0_i32_1 = arith.constant 0 : i32
    %c0_i32_2 = arith.constant 0 : i32
    %c0_i32_3 = arith.constant 0 : i32
    %3 = tpu.memref_slice %arg2[%c0_i32_0, %c0_i32_1, %c0_i32_2, %c0_i32_3] : memref<1x18x18x32xf32, #tpu.memory_space<vmem>> -> memref<1x18x18x32xf32, #tpu.memory_space<vmem>>
    %4 = tpu.memref_squeeze %3 : memref<1x18x18x32xf32, #tpu.memory_space<vmem>> -> memref<18x18x32xf32, #tpu.memory_space<vmem>>
    %5 = arith.index_cast %2 : i32 to index
    %c0 = arith.constant 0 : index
    %c0_4 = arith.constant 0 : index
    %6 = vector.load %4[%5, %c0, %c0_4] : memref<18x18x32xf32, #tpu.memory_space<vmem>>, vector<16x16x32xf32>
    %c0_5 = arith.constant 0 : index
    %c0_6 = arith.constant 0 : index
    %7 = vector.load %arg3[%c0_5, %c0_6] : memref<9x32xf32, #tpu.memory_space<vmem>>, vector<1x32xf32>
    %8 = vector.shape_cast %7 : vector<1x32xf32> to vector<32xf32>
    %9 = vector.shape_cast %8 : vector<32xf32> to vector<1x1x32xf32>
    %10 = vector.broadcast %9 : vector<1x1x32xf32> to vector<16x16x32xf32>
    %11 = arith.mulf %6, %10 : vector<16x16x32xf32>
    %c0_i32_7 = arith.constant 0 : i32
    %12 = arith.addi %1, %c0_i32_7 : i32
    %c0_i32_8 = arith.constant 0 : i32
    %c0_i32_9 = arith.constant 0 : i32
    %c0_i32_10 = arith.constant 0 : i32
    %c0_i32_11 = arith.constant 0 : i32
    %13 = tpu.memref_slice %arg2[%c0_i32_8, %c0_i32_9, %c0_i32_10, %c0_i32_11] : memref<1x18x18x32xf32, #tpu.memory_space<vmem>> -> memref<1x18x18x32xf32, #tpu.memory_space<vmem>>
    %14 = tpu.memref_squeeze %13 : memref<1x18x18x32xf32, #tpu.memory_space<vmem>> -> memref<18x18x32xf32, #tpu.memory_space<vmem>>
    %15 = arith.index_cast %12 : i32 to index
    %c1 = arith.constant 1 : index
    %c0_12 = arith.constant 0 : index
    %16 = vector.load %14[%15, %c1, %c0_12] : memref<18x18x32xf32, #tpu.memory_space<vmem>>, vector<16x16x32xf32>
    %c1_13 = arith.constant 1 : index
    %c0_14 = arith.constant 0 : index
    %17 = vector.load %arg3[%c1_13, %c0_14] : memref<9x32xf32, #tpu.memory_space<vmem>>, vector<1x32xf32>
    %18 = vector.shape_cast %17 : vector<1x32xf32> to vector<32xf32>
    %19 = vector.shape_cast %18 : vector<32xf32> to vector<1x1x32xf32>
    %20 = vector.broadcast %19 : vector<1x1x32xf32> to vector<16x16x32xf32>
    %21 = arith.mulf %16, %20 : vector<16x16x32xf32>
    %c0_i32_15 = arith.constant 0 : i32
    %22 = arith.addi %1, %c0_i32_15 : i32
    %c0_i32_16 = arith.constant 0 : i32
    %c0_i32_17 = arith.constant 0 : i32
    %c0_i32_18 = arith.constant 0 : i32
    %c0_i32_19 = arith.constant 0 : i32
    %23 = tpu.memref_slice %arg2[%c0_i32_16, %c0_i32_17, %c0_i32_18, %c0_i32_19] : memref<1x18x18x32xf32, #tpu.memory_space<vmem>> -> memref<1x18x18x32xf32, #tpu.memory_space<vmem>>
    %24 = tpu.memref_squeeze %23 : memref<1x18x18x32xf32, #tpu.memory_space<vmem>> -> memref<18x18x32xf32, #tpu.memory_space<vmem>>
    %25 = arith.index_cast %22 : i32 to index
    %c2 = arith.constant 2 : index
    %c0_20 = arith.constant 0 : index
    %26 = vector.load %24[%25, %c2, %c0_20] : memref<18x18x32xf32, #tpu.memory_space<vmem>>, vector<16x16x32xf32>
    %c2_21 = arith.constant 2 : index
    %c0_22 = arith.constant 0 : index
    %27 = vector.load %arg3[%c2_21, %c0_22] : memref<9x32xf32, #tpu.memory_space<vmem>>, vector<1x32xf32>
    %28 = vector.shape_cast %27 : vector<1x32xf32> to vector<32xf32>
    %29 = vector.shape_cast %28 : vector<32xf32> to vector<1x1x32xf32>
    %30 = vector.broadcast %29 : vector<1x1x32xf32> to vector<16x16x32xf32>
    %31 = arith.mulf %26, %30 : vector<16x16x32xf32>
    %c1_i32 = arith.constant 1 : i32
    %32 = arith.addi %1, %c1_i32 : i32
    %c0_i32_23 = arith.constant 0 : i32
    %c0_i32_24 = arith.constant 0 : i32
    %c0_i32_25 = arith.constant 0 : i32
    %c0_i32_26 = arith.constant 0 : i32
    %33 = tpu.memref_slice %arg2[%c0_i32_23, %c0_i32_24, %c0_i32_25, %c0_i32_26] : memref<1x18x18x32xf32, #tpu.memory_space<vmem>> -> memref<1x18x18x32xf32, #tpu.memory_space<vmem>>
    %34 = tpu.memref_squeeze %33 : memref<1x18x18x32xf32, #tpu.memory_space<vmem>> -> memref<18x18x32xf32, #tpu.memory_space<vmem>>
    %35 = arith.index_cast %32 : i32 to index
    %c0_27 = arith.constant 0 : index
    %c0_28 = arith.constant 0 : index
    %36 = vector.load %34[%35, %c0_27, %c0_28] : memref<18x18x32xf32, #tpu.memory_space<vmem>>, vector<16x16x32xf32>
    %c3 = arith.constant 3 : index
    %c0_29 = arith.constant 0 : index
    %37 = vector.load %arg3[%c3, %c0_29] : memref<9x32xf32, #tpu.memory_space<vmem>>, vector<1x32xf32>
    %38 = vector.shape_cast %37 : vector<1x32xf32> to vector<32xf32>
    %39 = vector.shape_cast %38 : vector<32xf32> to vector<1x1x32xf32>
    %40 = vector.broadcast %39 : vector<1x1x32xf32> to vector<16x16x32xf32>
    %41 = arith.mulf %36, %40 : vector<16x16x32xf32>
    %c1_i32_30 = arith.constant 1 : i32
    %42 = arith.addi %1, %c1_i32_30 : i32
    %c0_i32_31 = arith.constant 0 : i32
    %c0_i32_32 = arith.constant 0 : i32
    %c0_i32_33 = arith.constant 0 : i32
    %c0_i32_34 = arith.constant 0 : i32
    %43 = tpu.memref_slice %arg2[%c0_i32_31, %c0_i32_32, %c0_i32_33, %c0_i32_34] : memref<1x18x18x32xf32, #tpu.memory_space<vmem>> -> memref<1x18x18x32xf32, #tpu.memory_space<vmem>>
    %44 = tpu.memref_squeeze %43 : memref<1x18x18x32xf32, #tpu.memory_space<vmem>> -> memref<18x18x32xf32, #tpu.memory_space<vmem>>
    %45 = arith.index_cast %42 : i32 to index
    %c1_35 = arith.constant 1 : index
    %c0_36 = arith.constant 0 : index
    %46 = vector.load %44[%45, %c1_35, %c0_36] : memref<18x18x32xf32, #tpu.memory_space<vmem>>, vector<16x16x32xf32>
    %c4 = arith.constant 4 : index
    %c0_37 = arith.constant 0 : index
    %47 = vector.load %arg3[%c4, %c0_37] : memref<9x32xf32, #tpu.memory_space<vmem>>, vector<1x32xf32>
    %48 = vector.shape_cast %47 : vector<1x32xf32> to vector<32xf32>
    %49 = vector.shape_cast %48 : vector<32xf32> to vector<1x1x32xf32>
    %50 = vector.broadcast %49 : vector<1x1x32xf32> to vector<16x16x32xf32>
    %51 = arith.mulf %46, %50 : vector<16x16x32xf32>
    %c1_i32_38 = arith.constant 1 : i32
    %52 = arith.addi %1, %c1_i32_38 : i32
    %c0_i32_39 = arith.constant 0 : i32
    %c0_i32_40 = arith.constant 0 : i32
    %c0_i32_41 = arith.constant 0 : i32
    %c0_i32_42 = arith.constant 0 : i32
    %53 = tpu.memref_slice %arg2[%c0_i32_39, %c0_i32_40, %c0_i32_41, %c0_i32_42] : memref<1x18x18x32xf32, #tpu.memory_space<vmem>> -> memref<1x18x18x32xf32, #tpu.memory_space<vmem>>
    %54 = tpu.memref_squeeze %53 : memref<1x18x18x32xf32, #tpu.memory_space<vmem>> -> memref<18x18x32xf32, #tpu.memory_space<vmem>>
    %55 = arith.index_cast %52 : i32 to index
    %c2_43 = arith.constant 2 : index
    %c0_44 = arith.constant 0 : index
    %56 = vector.load %54[%55, %c2_43, %c0_44] : memref<18x18x32xf32, #tpu.memory_space<vmem>>, vector<16x16x32xf32>
    %c5 = arith.constant 5 : index
    %c0_45 = arith.constant 0 : index
    %57 = vector.load %arg3[%c5, %c0_45] : memref<9x32xf32, #tpu.memory_space<vmem>>, vector<1x32xf32>
    %58 = vector.shape_cast %57 : vector<1x32xf32> to vector<32xf32>
    %59 = vector.shape_cast %58 : vector<32xf32> to vector<1x1x32xf32>
    %60 = vector.broadcast %59 : vector<1x1x32xf32> to vector<16x16x32xf32>
    %61 = arith.mulf %56, %60 : vector<16x16x32xf32>
    %c2_i32 = arith.constant 2 : i32
    %62 = arith.addi %1, %c2_i32 : i32
    %c0_i32_46 = arith.constant 0 : i32
    %c0_i32_47 = arith.constant 0 : i32
    %c0_i32_48 = arith.constant 0 : i32
    %c0_i32_49 = arith.constant 0 : i32
    %63 = tpu.memref_slice %arg2[%c0_i32_46, %c0_i32_47, %c0_i32_48, %c0_i32_49] : memref<1x18x18x32xf32, #tpu.memory_space<vmem>> -> memref<1x18x18x32xf32, #tpu.memory_space<vmem>>
    %64 = tpu.memref_squeeze %63 : memref<1x18x18x32xf32, #tpu.memory_space<vmem>> -> memref<18x18x32xf32, #tpu.memory_space<vmem>>
    %65 = arith.index_cast %62 : i32 to index
    %c0_50 = arith.constant 0 : index
    %c0_51 = arith.constant 0 : index
    %66 = vector.load %64[%65, %c0_50, %c0_51] : memref<18x18x32xf32, #tpu.memory_space<vmem>>, vector<16x16x32xf32>
    %c6 = arith.constant 6 : index
    %c0_52 = arith.constant 0 : index
    %67 = vector.load %arg3[%c6, %c0_52] : memref<9x32xf32, #tpu.memory_space<vmem>>, vector<1x32xf32>
    %68 = vector.shape_cast %67 : vector<1x32xf32> to vector<32xf32>
    %69 = vector.shape_cast %68 : vector<32xf32> to vector<1x1x32xf32>
    %70 = vector.broadcast %69 : vector<1x1x32xf32> to vector<16x16x32xf32>
    %71 = arith.mulf %66, %70 : vector<16x16x32xf32>
    %c2_i32_53 = arith.constant 2 : i32
    %72 = arith.addi %1, %c2_i32_53 : i32
    %c0_i32_54 = arith.constant 0 : i32
    %c0_i32_55 = arith.constant 0 : i32
    %c0_i32_56 = arith.constant 0 : i32
    %c0_i32_57 = arith.constant 0 : i32
    %73 = tpu.memref_slice %arg2[%c0_i32_54, %c0_i32_55, %c0_i32_56, %c0_i32_57] : memref<1x18x18x32xf32, #tpu.memory_space<vmem>> -> memref<1x18x18x32xf32, #tpu.memory_space<vmem>>
    %74 = tpu.memref_squeeze %73 : memref<1x18x18x32xf32, #tpu.memory_space<vmem>> -> memref<18x18x32xf32, #tpu.memory_space<vmem>>
    %75 = arith.index_cast %72 : i32 to index
    %c1_58 = arith.constant 1 : index
    %c0_59 = arith.constant 0 : index
    %76 = vector.load %74[%75, %c1_58, %c0_59] : memref<18x18x32xf32, #tpu.memory_space<vmem>>, vector<16x16x32xf32>
    %c7 = arith.constant 7 : index
    %c0_60 = arith.constant 0 : index
    %77 = vector.load %arg3[%c7, %c0_60] : memref<9x32xf32, #tpu.memory_space<vmem>>, vector<1x32xf32>
    %78 = vector.shape_cast %77 : vector<1x32xf32> to vector<32xf32>
    %79 = vector.shape_cast %78 : vector<32xf32> to vector<1x1x32xf32>
    %80 = vector.broadcast %79 : vector<1x1x32xf32> to vector<16x16x32xf32>
    %81 = arith.mulf %76, %80 : vector<16x16x32xf32>
    %c2_i32_61 = arith.constant 2 : i32
    %82 = arith.addi %1, %c2_i32_61 : i32
    %c0_i32_62 = arith.constant 0 : i32
    %c0_i32_63 = arith.constant 0 : i32
    %c0_i32_64 = arith.constant 0 : i32
    %c0_i32_65 = arith.constant 0 : i32
    %83 = tpu.memref_slice %arg2[%c0_i32_62, %c0_i32_63, %c0_i32_64, %c0_i32_65] : memref<1x18x18x32xf32, #tpu.memory_space<vmem>> -> memref<1x18x18x32xf32, #tpu.memory_space<vmem>>
    %84 = tpu.memref_squeeze %83 : memref<1x18x18x32xf32, #tpu.memory_space<vmem>> -> memref<18x18x32xf32, #tpu.memory_space<vmem>>
    %85 = arith.index_cast %82 : i32 to index
    %c2_66 = arith.constant 2 : index
    %c0_67 = arith.constant 0 : index
    %86 = vector.load %84[%85, %c2_66, %c0_67] : memref<18x18x32xf32, #tpu.memory_space<vmem>>, vector<16x16x32xf32>
    %c8 = arith.constant 8 : index
    %c0_68 = arith.constant 0 : index
    %87 = vector.load %arg3[%c8, %c0_68] : memref<9x32xf32, #tpu.memory_space<vmem>>, vector<1x32xf32>
    %88 = vector.shape_cast %87 : vector<1x32xf32> to vector<32xf32>
    %89 = vector.shape_cast %88 : vector<32xf32> to vector<1x1x32xf32>
    %90 = vector.broadcast %89 : vector<1x1x32xf32> to vector<16x16x32xf32>
    %91 = arith.mulf %86, %90 : vector<16x16x32xf32>
    %92 = arith.addf %11, %21 : vector<16x16x32xf32>
    %93 = arith.addf %31, %41 : vector<16x16x32xf32>
    %94 = arith.addf %51, %61 : vector<16x16x32xf32>
    %95 = arith.addf %71, %81 : vector<16x16x32xf32>
    %96 = arith.addf %92, %93 : vector<16x16x32xf32>
    %97 = arith.addf %94, %95 : vector<16x16x32xf32>
    %98 = arith.addf %96, %97 : vector<16x16x32xf32>
    %99 = arith.addf %98, %91 : vector<16x16x32xf32>
    %c0_69 = arith.constant 0 : index
    %c0_70 = arith.constant 0 : index
    %100 = vector.load %arg4[%c0_69, %c0_70] : memref<1x32xf32, #tpu.memory_space<vmem>>, vector<1x32xf32>
    %101 = vector.shape_cast %100 : vector<1x32xf32> to vector<32xf32>
    %102 = vector.shape_cast %101 : vector<32xf32> to vector<1x1x32xf32>
    %103 = vector.broadcast %102 : vector<1x1x32xf32> to vector<16x16x32xf32>
    %104 = arith.mulf %99, %103 : vector<16x16x32xf32>
    %c0_71 = arith.constant 0 : index
    %c0_72 = arith.constant 0 : index
    %105 = vector.load %arg5[%c0_71, %c0_72] : memref<1x32xf32, #tpu.memory_space<vmem>>, vector<1x32xf32>
    %106 = vector.shape_cast %105 : vector<1x32xf32> to vector<32xf32>
    %107 = vector.shape_cast %106 : vector<32xf32> to vector<1x1x32xf32>
    %108 = vector.broadcast %107 : vector<1x1x32xf32> to vector<16x16x32xf32>
    %109 = arith.addf %104, %108 : vector<16x16x32xf32>
    %110 = vector.shape_cast %109 : vector<16x16x32xf32> to vector<256x32xf32>
    %111 = arith.truncf %110 : vector<256x32xf32> to vector<256x32xbf16>
    %c0_73 = arith.constant 0 : index
    %c0_74 = arith.constant 0 : index
    %112 = vector.load %arg6[%c0_73, %c0_74] : memref<32x64xbf16, #tpu.memory_space<vmem>>, vector<32x64xbf16>
    %cst = arith.constant dense<0.000000e+00> : vector<256x64xf32>
    %113 = tpu.matmul %111, %112, %cst {dimension_numbers = #tpu.dot_dimension_numbers<[1], [0], [0], [1], [0, 0, 1, 1], [], []>} : vector<256x32xbf16>, vector<32x64xbf16>, vector<256x64xf32> -> vector<256x64xf32>
    %114 = vector.shape_cast %113 : vector<256x64xf32> to vector<16x16x64xf32>
    %c0_75 = arith.constant 0 : index
    %c0_76 = arith.constant 0 : index
    %c0_77 = arith.constant 0 : index
    %c0_78 = arith.constant 0 : index
    %115 = vector.load %arg7[%c0_75, %c0_76, %c0_77, %c0_78] : memref<1x16x16x64xf32, #tpu.memory_space<vmem>>, vector<1x16x16x64xf32>
    %116 = vector.shape_cast %115 : vector<1x16x16x64xf32> to vector<16x16x64xf32>
    %117 = vector.shape_cast %114 : vector<16x16x64xf32> to vector<1x16x16x64xf32>
    tpu.vector_store %arg7[%c0_75, %c0_76, %c0_77, %c0_78], %117 {strides = array<i32>} : memref<1x16x16x64xf32, #tpu.memory_space<vmem>>, vector<1x16x16x64xf32>,
    return
  }
  func.func @transform_0(%arg0: i32, %arg1: i32) -> (i32, i32, i32, i32) {
    %c0_i32 = arith.constant 0 : i32
    %c0_i32_0 = arith.constant 0 : i32
    %c0_i32_1 = arith.constant 0 : i32
    %c0_i32_2 = arith.constant 0 : i32
    return %arg0, %c0_i32, %c0_i32_0, %c0_i32_1 : i32, i32, i32, i32
  }
  func.func @transform_1(%arg0: i32, %arg1: i32) -> (i32, i32) {
    %c0_i32 = arith.constant 0 : i32
    %c0_i32_0 = arith.constant 0 : i32
    %c0_i32_1 = arith.constant 0 : i32
    return %c0_i32, %c0_i32_0 : i32, i32
  }
  func.func @transform_2(%arg0: i32, %arg1: i32) -> (i32, i32) {
    %c0_i32 = arith.constant 0 : i32
    %c0_i32_0 = arith.constant 0 : i32
    %c0_i32_1 = arith.constant 0 : i32
    return %c0_i32, %c0_i32_0 : i32, i32
  }
  func.func @transform_3(%arg0: i32, %arg1: i32) -> (i32, i32) {
    %c0_i32 = arith.constant 0 : i32
    %c0_i32_0 = arith.constant 0 : i32
    %c0_i32_1 = arith.constant 0 : i32
    return %c0_i32, %c0_i32_0 : i32, i32
  }
  func.func @transform_4(%arg0: i32, %arg1: i32) -> (i32, i32) {
    %c0_i32 = arith.constant 0 : i32
    %c0_i32_0 = arith.constant 0 : i32
    %c0_i32_1 = arith.constant 0 : i32
    return %c0_i32, %c0_i32_0 : i32, i32
  }
  func.func @transform_5(%arg0: i32, %arg1: i32) -> (i32, i32, i32, i32) {
    %c0_i32 = arith.constant 0 : i32
    %c0_i32_0 = arith.constant 0 : i32
    %c0_i32_1 = arith.constant 0 : i32
    return %arg0, %arg1, %c0_i32, %c0_i32_0 : i32, i32, i32, i32
  }
}

</mosaic_0001>

<bundles_post_ra>
// kernel: separable_conv2d.1
= control target key start
LH: loop header
LB: loop body
LE: loop exit
PB: predicated region body
PF: predicated region fallthrough
CT: control target
= control target key end

     0   :  { %10 = vsyncpa [#allocation3], 0  ;;  %s3302_s0 = inlined_call_operand.vmem [shape: f32[2,18,18,32], index: 0, kind: input, shape index: {}]   ;;  %s3303_s1 = inlined_call_operand.vmem [shape: f32[9,32], index: 1, kind: input, shape index: {}]   ;;  %s3304_s2 = inlined_call_operand.vmem [shape: f32[1,32], index: 2, kind: input, shape index: {}]   ;;  %s3305_s3 = inlined_call_operand.vmem [shape: f32[1,32], index: 3, kind: input, shape index: {}]   ;;  %s3306_s4 = inlined_call_operand.vmem [shape: bf16[32,64], index: 4, kind: input, shape index: {}]   ;;  %s3307_s5 = inlined_call_operand.hbm [shape: f32[2,16,16,64], index: 5, kind: output, shape index: {}]  }
   0x1   :  { %12 = vsyncpa [#allocation3 + $0x1], 0  ;;  %s2054_s18 = smov 0   ;;  %s2056_s19 = smov 0  }
   0x2   :  { %s2058_s20 = smov 0   ;;  %s2060_s21 = smov 0  }
   0x3   :  { %s2062_s22 = smov 0   ;;  %s2064_s23 = smov 0  }
   0x4 LB: > { %s1578_s24 = sadd.s32 4294967295, %s2019_s23   ;;  %s1579_s25 = sadd.s32 4294967294, %s2019_s23   ;;  %s2019_s23 = sphi %s2064_s23, %s18_s23   ;;  %s2015_s22 = sphi %s2062_s22, %s3434_s22   ;;  %s2011_s21 = sphi %s2060_s21, %s3433_s21   ;;  %s2007_s20 = sphi %s2058_s20, %s3432_s20   ;;  %s2003_s19 = sphi %s2056_s19, %s3431_s19   ;;  %s1999_s18 = sphi %s2054_s18, %s3430_s18  }
   0x5   : > { %s30_s26 = sadd.s32 1, %s2015_s22  ;;  %s149_s27 = sadd.s32 1, %s2007_s20 }
   0x6   : > { %p32_p0 = scmp.ge.s32.totalorder %s30_s26, 2  ;;  %p159_p1 = scmp.ne.s32.totalorder %s2007_s20, %s2003_s19 }
   0x7   : > { %p160_p2 = scmp.eq.s32.totalorder %s1578_s24, 1  ;;  %p165_p3 = scmp.ne.s32.totalorder %s2003_s19, %s1999_s18 }
   0x8   : > { %s3436_s26 = smov (%p32_p0, %s30_s26), 0  ;;  %p166_p5 = scmp.eq.s32.totalorder %s1579_s25, 1 }
   0x9   : > { %p2094_p4 = por %p160_p2, %p159_p1  ;;  %s144_s29 = ssub.s32 %s2015_s22, %s3436_s26 }
   0xa   : > { %p1582_p6 = scmp.ge.s32.totalorder %s2019_s23, 1  ;;  %p147_p7 = scmp.eq.s32.totalorder %s144_s29, 0 }
   0xb   : > { %p2101_p8 = por %p166_p5, %p165_p3  ;;  %p204_p9 = scmp.lt.s32.totalorder %s2019_s23, 3 }
   0xc   : > { %s2107_s6 = scalar_select %p147_p7, %s2007_s20, %s149_s27  }
   0xd   : > { %p205_p10 = pnand %p1582_p6, %p204_p9 }
   0xf   : > { %208 = sbr.rel (%p205_p10) target bundleno = 426 (0x1aa), region = 40 }
  0x16   : > { %v1928_v0 = vld [vmem:[%s3306_s4] sm:$0xff]   ;;  %p232_p11 = scmp.lt.s32.totalorder %s2011_s21, 1  ;;  %v1929_v1 = vld [vmem:[%s3306_s4 + $0x8] sm:$0xff]   ;;  %vm1235_vm0 = vcmask 261120   ;;  %vm1445_vm1 = vcmask 523264   ;;  %s1811_s25 = sshll.u32 %s2011_s21, 12 }
  0x17   : > { %1830 = vmatprep.subr.bf16.mxu0 %v1928_v0  ;;  %1866 = vmatprep.subr.bf16.mxu1 %v1928_v0  ;;  %v2120_v2 = vld [vmem:[%s3303_s1] ss:$0 sm:$0xff]  ;;  %v2125_v3 = vld [vmem:[%s3303_s1 + $0x1] ss:$0 sm:$0xff]  ;;  %v2130_v4 = vld [vmem:[%s3303_s1 + $0x2] ss:$0 sm:$0xff]  ;;  %s3244_s9 = scalar_lea.hbm %s3307_s5, %s1811_s25 }
  0x18   : > { %s233_s11 = scalar_select %p232_p11, %s2011_s21, 1  ;;  %1831 = vmatpush3.bf16.msra.mxu0 %v1928_v0  ;;  %1868 = vmatpush3.bf16.msra.mxu1 %v1928_v0  ;;  %v2140_v5 = vld [vmem:[%s3303_s1 + $0x3] ss:$0 sm:$0xff]  ;;  %v2145_v6 = vld [vmem:[%s3303_s1 + $0x4] ss:$0 sm:$0xff] }
  0x19   : > { %1832 = vmatprep.subr.bf16.mxu0 %v1929_v1  ;;  %1867 = vmatprep.subr.bf16.mxu1 %v1929_v1  ;;  %v2150_v7 = vld [vmem:[%s3303_s1 + $0x5] ss:$0 sm:$0xff]  ;;  %v2158_v11 = vld [vmem:[%s3303_s1 + $0x6] ss:$0 sm:$0xff]  ;;  %v2163_v12 = vld [vmem:[%s3303_s1 + $0x7] ss:$0 sm:$0xff] }
  0x1a   : > { %s1870_s12 = smul.u32 432, %s233_s11  ;;  %v2174_v19 = vld [vmem:[%s3303_s1 + $0x8] ss:$0 sm:$0xff]  ;;  %s2021_s11 = smov [#allocation2]  }
  0x1b   : > { %s1945_s13 = sshll.u32 %s2021_s11, 4  ;;  %s1946_s13 = int_to_ptr.vmem [resolvable:$false] %s1945_s13 }
  0x1c   : > { %s2135_s29 = scalar_lea.vmem %s3302_s0, %s1870_s12  ;;  %1833 = vmatpush3.bf16.msra.mxu0 %v1929_v1  ;;  %1869 = vmatpush3.bf16.msra.mxu1 %v1929_v1  ;;  %s1947_s12 = scalar_lea.vmem %s1946_s13, 8192 }
  0x1d   : > { %v242_v8 = vld [vmem:[%s2135_s29] sm:$0xff]  ;;  %v243_v9 = vld [vmem:[%s2135_s29 + $0x8] sm:$0xff]  ;;  %v2180_v23 = vld [vmem:[%s2135_s29 + $0x18] sm:$0xff] }
  0x1e   : > { %v311_v10 = vld [vmem:[%s2135_s29 + $0x1] sm:$0xff]  ;;  %v279_v13 = vmul.f32 %v2120_v2, %v242_v8  ;;  %v280_v14 = vmul.f32 %v2120_v2, %v243_v9  ;;  %v312_v15 = vld [vmem:[%s2135_s29 + $0x9] sm:$0xff]  ;;  %v2186_v25 = vld [vmem:[%s2135_s29 + $0x19] sm:$0xff]  ;;  %v489_v26 = vmul.f32 %v2140_v5, %v2180_v23 }
  0x1f   : > { %v348_v16 = vmul.f32 %v2125_v3, %v311_v10  ;;  %v380_v17 = vld [vmem:[%s2135_s29 + $0x2] sm:$0xff]  ;;  %v381_v18 = vld [vmem:[%s2135_s29 + $0xa] sm:$0xff]  ;;  %v349_v20 = vmul.f32 %v2125_v3, %v312_v15  ;;  %v558_v29 = vmul.f32 %v2145_v6, %v2186_v25  ;;  %v2198_v30 = vld [vmem:[%s2135_s29 + $0x1a] sm:$0xff] }
  0x20   : > { %v417_v21 = vmul.f32 %v2130_v4, %v380_v17  ;;  %v418_v22 = vmul.f32 %v2130_v4, %v381_v18  ;;  %v2183_v24 = vld [vmem:[%s2135_s29 + $0x20] sm:$0xff]  ;;  %v627_v34 = vmul.f32 %v2150_v7, %v2198_v30  ;;  %v2210_v36 = vld [vmem:[%s2135_s29 + $0x30] sm:$0xff]  ;;  %v2213_v37 = vld [vmem:[%s2135_s29 + $0x38] sm:$0xff] }
  0x21   : > { %v490_v27 = vmul.f32 %v2140_v5, %v2183_v24  ;;  %v2193_v28 = vld [vmem:[%s2135_s29 + $0x21] sm:$0xff]  ;;  %v869_v32 = vadd.f32 %v348_v16, %v279_v13  ;;  %v2216_v38 = vld [vmem:[%s2135_s29 + $0x31] sm:$0xff]  ;;  %v870_v39 = vadd.f32 %v349_v20, %v280_v14  ;;  %v699_v40 = vmul.f32 %v2158_v11, %v2210_v36  ;;  %v2223_v42 = vld [vmem:[%s2135_s29 + $0x39] sm:$0xff] }
  0x22   : > { %v2201_v31 = vld [vmem:[%s2135_s29 + $0x22] sm:$0xff]  ;;  %v559_v33 = vmul.f32 %v2145_v6, %v2193_v28  ;;  %v700_v41 = vmul.f32 %v2158_v11, %v2213_v37  ;;  %v768_v43 = vmul.f32 %v2163_v12, %v2216_v38  ;;  %v2228_v44 = vld [vmem:[%s2135_s29 + $0x32] sm:$0xff]  ;;  %v2231_v45 = vld [vmem:[%s2135_s29 + $0x3a] sm:$0xff]  ;;  %v901_v46 = vadd.f32 %v489_v26, %v417_v21 }
  0x23   : > { %v628_v35 = vmul.f32 %v2150_v7, %v2201_v31  ;;  %v769_v47 = vmul.f32 %v2163_v12, %v2223_v42  ;;  %v837_v48 = vmul.f32 %v2174_v19, %v2228_v44  ;;  %v838_v49 = vmul.f32 %v2174_v19, %v2231_v45  ;;  %v258_v51 = vld [vmem:[%s2135_s29 + $0xc0] sm:$0xff]  ;;  %v259_v52 = vld [vmem:[%s2135_s29 + $0xc8] sm:$0xff]  ;;  %v2248_v1 = vld [vmem:[%s2135_s29 + $0xd8] sm:$0xff] }
  0x24   : > { %v902_v50 = vadd.f32 %v490_v27, %v418_v22  ;;  %v327_v53 = vld [vmem:[%s2135_s29 + $0xc1] sm:$0xff]  ;;  %v933_v54 = vadd.f32 %v627_v34, %v558_v29  ;;  %v965_v56 = vadd.f32 %v768_v43, %v699_v40  ;;  %v997_v57 = vadd.f32 %v901_v46, %v869_v32  ;;  %v328_v58 = vld [vmem:[%s2135_s29 + $0xc9] sm:$0xff]  ;;  %v2254_v9 = vld [vmem:[%s2135_s29 + $0xd9] sm:$0xff] }
  0x25   : > { %v934_v55 = vadd.f32 %v628_v35, %v559_v33  ;;  %v396_v59 = vld [vmem:[%s2135_s29 + $0xc2] sm:$0xff]  ;;  %v397_v60 = vld [vmem:[%s2135_s29 + $0xca] sm:$0xff]  ;;  %v966_v61 = vadd.f32 %v769_v47, %v700_v41  ;;  %v295_v63 = vmul.f32 %v2120_v2, %v258_v51  ;;  %v296_v0 = vmul.f32 %v2120_v2, %v259_v52  ;;  %v2263_v17 = vld [vmem:[%s2135_s29 + $0xda] sm:$0xff] }
  0x26   : > { %v998_v62 = vadd.f32 %v902_v50, %v870_v39  ;;  %v2251_v8 = vld [vmem:[%s2135_s29 + $0xe0] sm:$0xff]  ;;  %v1029_v10 = vadd.f32 %v965_v56, %v933_v54  ;;  %v364_v13 = vmul.f32 %v2125_v3, %v327_v53  ;;  %v365_v14 = vmul.f32 %v2125_v3, %v328_v58  ;;  %v2274_v27 = vld [vmem:[%s2135_s29 + $0xf0] sm:$0xff]  ;;  %v2277_v29 = vld [vmem:[%s2135_s29 + $0xf8] sm:$0xff] }
  0x27   : > { %v433_v15 = vmul.f32 %v2130_v4, %v396_v59  ;;  %v2260_v16 = vld [vmem:[%s2135_s29 + $0xe1] sm:$0xff]  ;;  %v1030_v20 = vadd.f32 %v966_v61, %v934_v55  ;;  %v434_v21 = vmul.f32 %v2130_v4, %v397_v60  ;;  %v505_v22 = vmul.f32 %v2140_v5, %v2248_v1  ;;  %3368 = vst [vmem:[#allocation5_spill] sm:$0xff] %v2277_v29  ;;  %v2280_v32 = vld [vmem:[%s2135_s29 + $0xf1] sm:$0xff]  ;;  %v2289_v40 = vld [vmem:[%s2135_s29 + $0xf9] sm:$0xff] }
  0x28   : > { %v2266_v18 = vld [vmem:[%s2135_s29 + $0xe2] sm:$0xff]  ;;  %v506_v26 = vmul.f32 %v2140_v5, %v2251_v8  ;;  %3369 = vst [vmem:[#allocation6_spill] sm:$0xff] %v2280_v32  ;;  %v1061_v33 = vadd.f32 %v1029_v10, %v997_v57  ;;  %v574_v34 = vmul.f32 %v2145_v6, %v2254_v9  ;;  %v575_v35 = vmul.f32 %v2145_v6, %v2260_v16  ;;  %v2294_v43 = vld [vmem:[%s3304_s2] ss:$0 sm:$0xff]  ;;  %v2303_v51 = vld [vmem:[%s2135_s29 + $0xf2] sm:$0xff] }
  0x29   : > { %v643_v39 = vmul.f32 %v2150_v7, %v2263_v17  ;;  %3370 = vst [vmem:[#allocation7_spill] sm:$0xff] %v2289_v40  ;;  %v1062_v41 = vadd.f32 %v1030_v20, %v998_v62  ;;  %v644_v46 = vmul.f32 %v2150_v7, %v2266_v18  ;;  %v715_v47 = vmul.f32 %v2158_v11, %v2274_v27  ;;  %v2310_v55 = vld [vmem:[%s2135_s29 + $0xfa] sm:$0xff] }
  0x2a   : > { %v716_v50 = vmul.f32 %v2158_v11, %v2277_v29  ;;  %3371 = vst [vmem:[#allocation8_spill] sm:$0xff] %v2303_v51  ;;  %v1093_v52 = vadd.f32 %v1061_v33, %v837_v48  ;;  %v784_v53 = vmul.f32 %v2163_v12, %v2280_v32  ;;  %v785_v54 = vmul.f32 %v2163_v12, %v2289_v40  ;;  %v2317_v58 = vld [vmem:[%s3305_s3] ss:$0 sm:$0xff] }
  0x2b   : > { %v853_v56 = vmul.f32 %v2174_v19, %v2303_v51  ;;  %v1094_v57 = vadd.f32 %v1062_v41, %v838_v49  ;;  %v854_v48 = vmul.f32 %v2174_v19, %v2310_v55  ;;  %v885_v59 = vadd.f32 %v364_v13, %v295_v63 }
  0x2c   : > { %v886_v60 = vadd.f32 %v365_v14, %v296_v0  ;;  %v1132_v61 = vmul.f32 %v2294_v43, %v1093_v52  ;;  %v917_v62 = vadd.f32 %v505_v22, %v433_v15  ;;  %v918_v10 = vadd.f32 %v506_v26, %v434_v21 }
  0x2d   : > { %v949_v20 = vadd.f32 %v643_v39, %v574_v34  ;;  %v1133_v33 = vmul.f32 %v2294_v43, %v1094_v57  ;;  %v950_v51 = vadd.f32 %v644_v46, %v575_v35  ;;  %v981_v49 = vadd.f32 %v784_v53, %v715_v47  ;;  %v2338_v34 = vld [vmem:[%s2135_s29 + $0x48] sm:$0xff]  ;;  %v2341_v35 = vld [vmem:[%s2135_s29 + $0x50] sm:$0xff] }
  0x2e   : > { %v982_v41 = vadd.f32 %v785_v54, %v716_v50  ;;  %v1171_v40 = vadd.f32 %v2317_v58, %v1132_v61  ;;  %v1013_v32 = vadd.f32 %v917_v62, %v885_v59  ;;  %v1014_v29 = vadd.f32 %v918_v10, %v886_v60  ;;  %v2346_v47 = vld [vmem:[%s2135_s29 + $0x49] sm:$0xff] }
  0x2f   : > { %v281_v63 = vmul.f32 %v2180_v23, %v2120_v2  ;;  %v1172_v0 = vadd.f32 %v2317_v58, %v1133_v33  ;;  %v1045_v13 = vadd.f32 %v981_v49, %v949_v20  ;;  %v282_v15 = vmul.f32 %v2183_v24, %v2120_v2  ;;  %v2352_v50 = vld [vmem:[%s2135_s29 + $0x4a] sm:$0xff] }
  0x30   : > { %v1046_v14 = vadd.f32 %v982_v41, %v950_v51  ;;  %v350_v21 = vmul.f32 %v2186_v25, %v2125_v3  ;;  %v351_v22 = vmul.f32 %v2193_v28, %v2125_v3  ;;  %v419_v26 = vmul.f32 %v2198_v30, %v2130_v4  ;;  %v2349_v28 = vld [vmem:[%s2135_s29 + $0x51] sm:$0xff] }
  0x31   : > { %v420_v23 = vmul.f32 %v2201_v31, %v2130_v4  ;;  %v1203_v39 = vpack.c.bf16 %v1172_v0, %v1171_v40  ;;  %v1077_v46 = vadd.f32 %v1045_v13, %v1013_v32  ;;  %v491_v25 = vmul.f32 %v2210_v36, %v2140_v5  ;;  %v2363_v32 = vld [vmem:[%s2135_s29 + $0x52] sm:$0xff] }
  0x32   : > { %v1078_v24 = vadd.f32 %v1046_v14, %v1014_v29  ;;  %v492_v30 = vmul.f32 %v2213_v37, %v2140_v5  ;;  %v560_v31 = vmul.f32 %v2216_v38, %v2145_v6  ;;  %v561_v40 = vmul.f32 %v2223_v42, %v2145_v6 }
  0x33   : > { %v629_v29 = vmul.f32 %v2228_v44, %v2150_v7  ;;  %1834 = vmatprep.mubr.msk.bf16.mxu0 %vm1235_vm0, %v1203_v39  ;;  %v1109_v51 = vadd.f32 %v1077_v46, %v853_v56  ;;  %v630_v53 = vmul.f32 %v2231_v45, %v2150_v7  ;;  %v701_v54 = vmul.f32 %v2158_v11, %v2338_v34 }
  0x34   : > { %v1110_v52 = vadd.f32 %v1078_v24, %v854_v48  ;;  %v702_v57 = vmul.f32 %v2158_v11, %v2341_v35  ;;  %v770_v59 = vmul.f32 %v2163_v12, %v2346_v47  ;;  %v771_v60 = vmul.f32 %v2163_v12, %v2349_v28 }
  0x35   : > { %v839_v61 = vmul.f32 %v2174_v19, %v2352_v50  ;;  %v1148_v56 = vmul.f32 %v2294_v43, %v1109_v51  ;;  %v840_v62 = vmul.f32 %v2174_v19, %v2363_v32  ;;  %v871_v10 = vadd.f32 %v350_v21, %v281_v63 }
  0x36   : > { %v1149_v48 = vmul.f32 %v2294_v43, %v1110_v52  ;;  %v872_v20 = vadd.f32 %v351_v22, %v282_v15  ;;  %v903_v33 = vadd.f32 %v491_v25, %v419_v26  ;;  %v904_v49 = vadd.f32 %v492_v30, %v420_v23  ;;  %v2397_v30 = vld [vmem:[%s2135_s29 + $0x108] sm:$0xff] }
  0x37   : > { %v935_v41 = vadd.f32 %v629_v29, %v560_v31  ;;  %v1187_v0 = vadd.f32 %v2317_v58, %v1148_v56  ;;  %v936_v14 = vadd.f32 %v630_v53, %v561_v40  ;;  %v967_v39 = vadd.f32 %v770_v59, %v701_v54  ;;  %v2400_v31 = vld [vmem:[%s2135_s29 + $0x110] sm:$0xff] }
  0x38   : > { %v1188_v13 = vadd.f32 %v2317_v58, %v1149_v48  ;;  %v968_v46 = vadd.f32 %v771_v60, %v702_v57  ;;  %v999_v24 = vadd.f32 %v903_v33, %v871_v10  ;;  %v1000_v51 = vadd.f32 %v904_v49, %v872_v20  ;;  %3372 = vst [vmem:[#allocation9_spill] sm:$0xff] %v2400_v31  ;;  %v2403_v40 = vld [vmem:[%s2135_s29 + $0x109] sm:$0xff]  ;;  %v2413_v54 = vld [vmem:[%s2135_s29 + $0x111] sm:$0xff] }
  0x39   : > { %v297_v52 = vmul.f32 %v2248_v1, %v2120_v2  ;;  %v1031_v15 = vadd.f32 %v967_v39, %v935_v41  ;;  %v298_v21 = vmul.f32 %v2251_v8, %v2120_v2  ;;  %v366_v22 = vmul.f32 %v2254_v9, %v2125_v3  ;;  %3373 = vst [vmem:[#allocation10_spill] sm:$0xff] %v2403_v40  ;;  %v2419_v57 = vld [vmem:[%s2135_s29 + $0x112] sm:$0xff] }
  0x3a   : > { %v1211_v63 = vpack.c.bf16 %v1188_v13, %v1187_v0  ;;  %v1032_v26 = vadd.f32 %v968_v46, %v936_v14  ;;  %v367_v23 = vmul.f32 %v2260_v16, %v2125_v3  ;;  %v435_v25 = vmul.f32 %v2263_v17, %v2130_v4  ;;  %v3374_v16 = vld [vmem:[#allocation5_spill] sm:$0xff]  ;;  %v3375_v17 = vld [vmem:[#allocation6_spill] sm:$0xff]  ;;  %3378 = vst [vmem:[#allocation11_spill] sm:$0xff] %v2419_v57  ;;  %v3379_v60 = vld [vmem:[#allocation7_spill] sm:$0xff] }
  0x3b   : > { %v436_v1 = vmul.f32 %v2266_v18, %v2130_v4  ;;  %v1063_v8 = vadd.f32 %v1031_v15, %v999_v24  ;;  %v507_v9 = vmul.f32 %v2274_v27, %v2140_v5  ;;  %v508_v29 = vmul.f32 %v3374_v16, %v2140_v5  ;;  %3376 = vst [vmem:[#allocation5_spill] sm:$0xff] %v2413_v54  ;;  %v2416_v18 = vld [vmem:[%s2135_s29 + $0x10a] sm:$0xff]  ;;  %v3380_v48 = vld [vmem:[#allocation8_spill] sm:$0xff] }
  0x3c   : > { %1850 = vmatprep.mubr.msk.bf16.mxu1 %vm1235_vm0, %v1211_v63  ;;  %v576_v53 = vmul.f32 %v3375_v17, %v2145_v6  ;;  %3377 = vst [vmem:[#allocation6_spill] sm:$0xff] %v2416_v18  ;;  %v1064_v59 = vadd.f32 %v1032_v26, %v1000_v51  ;;  %v577_v56 = vmul.f32 %v3379_v60, %v2145_v6 }
  0x3d   : > { %v645_v10 = vmul.f32 %v3380_v48, %v2150_v7  ;;  %v646_v20 = vmul.f32 %v2310_v55, %v2150_v7  ;;  %v1095_v33 = vadd.f32 %v1063_v8, %v839_v61  ;;  %v717_v49 = vmul.f32 %v2158_v11, %v2397_v30 }
  0x3e   : > { %v718_v41 = vmul.f32 %v2158_v11, %v2400_v31  ;;  %v786_v0 = vmul.f32 %v2163_v12, %v2403_v40  ;;  %v1096_v13 = vadd.f32 %v1064_v59, %v840_v62  ;;  %v787_v14 = vmul.f32 %v2163_v12, %v2413_v54 }
  0x3f   : > { %v855_v39 = vmul.f32 %v2174_v19, %v2416_v18  ;;  %v856_v46 = vmul.f32 %v2174_v19, %v2419_v57  ;;  %v1134_v61 = vmul.f32 %v2294_v43, %v1095_v33  ;;  %v887_v24 = vadd.f32 %v366_v22, %v297_v52 }
  0x40   : > { %v888_v51 = vadd.f32 %v367_v23, %v298_v21  ;;  %v919_v63 = vadd.f32 %v507_v9, %v435_v25  ;;  %v1135_v15 = vmul.f32 %v2294_v43, %v1096_v13  ;;  %v920_v26 = vadd.f32 %v508_v29, %v436_v1  ;;  %v2452_v9 = vld [vmem:[%s2135_s29 + $0x60] sm:$0xff]  ;;  %v2490_v13 = vld [vmem:[%s2135_s29 + $0x6a] sm:$0xff] }
  0x41   : > { %v951_v8 = vadd.f32 %v645_v10, %v576_v53  ;;  %v952_v62 = vadd.f32 %v646_v20, %v577_v56  ;;  %v1173_v59 = vadd.f32 %v2317_v58, %v1134_v61  ;;  %v983_v54 = vadd.f32 %v786_v0, %v717_v49  ;;  %v2471_v56 = vld [vmem:[%s2135_s29 + $0x69] sm:$0xff] }
  0x42   : > { %v984_v40 = vadd.f32 %v787_v14, %v718_v41  ;;  %v1015_v18 = vadd.f32 %v919_v63, %v887_v24  ;;  %v1174_v57 = vadd.f32 %v2317_v58, %v1135_v15  ;;  %v1016_v31 = vadd.f32 %v920_v26, %v888_v51  ;;  %v2487_v0 = vld [vmem:[%s2135_s29 + $0x62] sm:$0xff] }
  0x43   : > { %v283_v52 = vmul.f32 %v2210_v36, %v2120_v2  ;;  %v284_v21 = vmul.f32 %v2213_v37, %v2120_v2  ;;  %v1047_v22 = vadd.f32 %v983_v54, %v951_v8  ;;  %v352_v25 = vmul.f32 %v2216_v38, %v2125_v3  ;;  %v2461_v54 = vld [vmem:[%s2135_s29 + $0x68] sm:$0xff] }
  0x44   : > { %v1048_v23 = vadd.f32 %v984_v40, %v952_v62  ;;  %v353_v1 = vmul.f32 %v2223_v42, %v2125_v3  ;;  %v1204_v29 = vpack.c.bf16 %v1174_v57, %v1173_v59  ;;  %v421_v53 = vmul.f32 %v2228_v44, %v2130_v4  ;;  %v2464_v40 = vld [vmem:[%s2135_s29 + $0x61] sm:$0xff] }
  0x45   : > { %v422_v36 = vmul.f32 %v2231_v45, %v2130_v4  ;;  %v493_v37 = vmul.f32 %v2338_v34, %v2140_v5  ;;  %v1079_v38 = vadd.f32 %v1047_v22, %v1015_v18  ;;  %v494_v57 = vmul.f32 %v2341_v35, %v2140_v5 }
  0x46   : > { %v1080_v42 = vadd.f32 %v1048_v23, %v1016_v31  ;;  %v562_v44 = vmul.f32 %v2346_v47, %v2145_v6  ;;  %1835 = vmatmul.mubr.msk.bf16.vlgmr.msra.gmra.mrb[0].mxu0 %vm1235_vm0, %v1204_v29  ;;  %v563_v45 = vmul.f32 %v2349_v28, %v2145_v6  ;;  %v631_v10 = vmul.f32 %v2352_v50, %v2150_v7 }
  0x47   : > { %v632_v18 = vmul.f32 %v2363_v32, %v2150_v7  ;;  %v703_v31 = vmul.f32 %v2158_v11, %v2452_v9  ;;  %v1111_v20 = vadd.f32 %v1079_v38, %v855_v39  ;;  %v704_v49 = vmul.f32 %v2158_v11, %v2461_v54 }
  0x48   : > { %v1112_v33 = vadd.f32 %v1080_v42, %v856_v46  ;;  %v772_v41 = vmul.f32 %v2163_v12, %v2464_v40  ;;  %v773_v14 = vmul.f32 %v2163_v12, %v2471_v56  ;;  %v841_v61 = vmul.f32 %v2174_v19, %v2487_v0 }
  0x49   : > { %v842_v39 = vmul.f32 %v2174_v19, %v2490_v13  ;;  %v873_v46 = vadd.f32 %v352_v25, %v283_v52  ;;  %v1150_v24 = vmul.f32 %v2294_v43, %v1111_v20  ;;  %v874_v63 = vadd.f32 %v353_v1, %v284_v21  ;;  %v3385_v20 = vld [vmem:[#allocation10_spill] sm:$0xff] }
  0x4a   : > { %v1151_v51 = vmul.f32 %v2294_v43, %v1112_v33  ;;  %v905_v15 = vadd.f32 %v493_v37, %v421_v53  ;;  %v906_v26 = vadd.f32 %v494_v57, %v422_v36  ;;  %v937_v8 = vadd.f32 %v631_v10, %v562_v44  ;;  %v2511_v57 = vld [vmem:[%s2135_s29 + $0x120] sm:$0xff]  ;;  %v2520_v10 = vld [vmem:[%s2135_s29 + $0x128] sm:$0xff] }
  0x4b   : > { %v938_v62 = vadd.f32 %v632_v18, %v563_v45  ;;  %v969_v59 = vadd.f32 %v772_v41, %v703_v31  ;;  %v1189_v22 = vadd.f32 %v2317_v58, %v1150_v24  ;;  %v970_v29 = vadd.f32 %v773_v14, %v704_v49  ;;  %3381 = vst [vmem:[#allocation7_spill] sm:$0xff] %v2520_v10  ;;  %v2523_v18 = vld [vmem:[%s2135_s29 + $0x121] sm:$0xff]  ;;  %v3388_v24 = vld [vmem:[#allocation11_spill] sm:$0xff] }
  0x4c   : > { %v1190_v23 = vadd.f32 %v2317_v58, %v1151_v51  ;;  %v1001_v38 = vadd.f32 %v905_v15, %v873_v46  ;;  %v1002_v52 = vadd.f32 %v906_v26, %v874_v63  ;;  %v299_v21 = vmul.f32 %v2274_v27, %v2120_v2  ;;  %3382 = vst [vmem:[#allocation8_spill] sm:$0xff] %v2523_v18  ;;  %v3384_v31 = vld [vmem:[#allocation9_spill] sm:$0xff]  ;;  %v3387_v14 = vld [vmem:[#allocation6_spill] sm:$0xff] }
  0x4d   : > { %v1033_v25 = vadd.f32 %v969_v59, %v937_v8  ;;  %v300_v1 = vmul.f32 %v3374_v16, %v2120_v2  ;;  %v1034_v36 = vadd.f32 %v970_v29, %v938_v62  ;;  %v368_v37 = vmul.f32 %v3375_v17, %v2125_v3  ;;  %v2526_v17 = vld [vmem:[%s2135_s29 + $0x129] sm:$0xff]  ;;  %v3386_v33 = vld [vmem:[#allocation5_spill] sm:$0xff] }
  0x4e   : > { %v1212_v53 = vpack.c.bf16 %v1190_v23, %v1189_v22  ;;  %v369_v42 = vmul.f32 %v3379_v60, %v2125_v3  ;;  %v437_v45 = vmul.f32 %v3380_v48, %v2130_v4  ;;  %v438_v27 = vmul.f32 %v2310_v55, %v2130_v4  ;;  %3383 = vst [vmem:[#allocation12_spill] sm:$0xff] %v2526_v17  ;;  %v2551_v59 = vld [vmem:[%s2135_s29 + $0x12a] sm:$0xff] }
  0x4f   : > { %v1065_v44 = vadd.f32 %v1033_v25, %v1001_v38  ;;  %v509_v16 = vmul.f32 %v2397_v30, %v2140_v5  ;;  %v1066_v60 = vadd.f32 %v1034_v36, %v1002_v52  ;;  %v510_v48 = vmul.f32 %v3384_v31, %v2140_v5 }
  0x50   : > { %1851 = vmatmul.mubr.msk.bf16.vlgmr.msra.gmra.mrb[0].mxu1 %vm1235_vm0, %v1212_v53  ;;  %v578_v55 = vmul.f32 %v3385_v20, %v2145_v6  ;;  %v579_v49 = vmul.f32 %v3386_v33, %v2145_v6  ;;  %v647_v46 = vmul.f32 %v3387_v14, %v2150_v7  ;;  %v648_v51 = vmul.f32 %v3388_v24, %v2150_v7 }
  0x51   : > { %v1097_v41 = vadd.f32 %v1065_v44, %v841_v61  ;;  %v719_v63 = vmul.f32 %v2158_v11, %v2511_v57  ;;  %v1098_v15 = vadd.f32 %v1066_v60, %v842_v39  ;;  %v720_v26 = vmul.f32 %v2158_v11, %v2520_v10  ;;  %v2548_v61 = vld [vmem:[%s2135_s29 + $0x122] sm:$0xff] }
  0x52   : > { %v788_v8 = vmul.f32 %v2163_v12, %v2523_v18  ;;  %v789_v62 = vmul.f32 %v2163_v12, %v2526_v17  ;;  %3389 = vst [vmem:[#allocation9_spill] sm:$0xff] %v2548_v61  ;;  %v857_v23 = vmul.f32 %v2174_v19, %v2548_v61  ;;  %v858_v39 = vmul.f32 %v2174_v19, %v2551_v59 }
  0x53   : > { %v1136_v22 = vmul.f32 %v2294_v43, %v1097_v41  ;;  %v889_v29 = vadd.f32 %v368_v37, %v299_v21  ;;  %v1137_v38 = vmul.f32 %v2294_v43, %v1098_v15  ;;  %v890_v52 = vadd.f32 %v369_v42, %v300_v1  ;;  %v2600_v15 = vld [vmem:[%s2135_s29 + $0x82] sm:$0xff] }
  0x54   : > { %v921_v25 = vadd.f32 %v509_v16, %v437_v45  ;;  %v922_v53 = vadd.f32 %v510_v48, %v438_v27  ;;  %v953_v44 = vadd.f32 %v647_v46, %v578_v55  ;;  %v954_v60 = vadd.f32 %v648_v51, %v579_v49  ;;  %v2575_v55 = vld [vmem:[%s2135_s29 + $0x80] sm:$0xff] }
  0x55   : > { %v1175_v36 = vadd.f32 %v2317_v58, %v1136_v22  ;;  %v985_v17 = vadd.f32 %v788_v8, %v719_v63  ;;  %v1176_v41 = vadd.f32 %v2317_v58, %v1137_v38  ;;  %v986_v18 = vadd.f32 %v789_v62, %v720_v26  ;;  %v2584_v49 = vld [vmem:[%s2135_s29 + $0x79] sm:$0xff] }
  0x56   : > { %v1017_v61 = vadd.f32 %v921_v25, %v889_v29  ;;  %v1018_v10 = vadd.f32 %v922_v53, %v890_v52  ;;  %v285_v1 = vmul.f32 %v2338_v34, %v2120_v2  ;;  %v286_v37 = vmul.f32 %v2341_v35, %v2120_v2  ;;  %v2590_v46 = vld [vmem:[%s2135_s29 + $0x7a] sm:$0xff] }
  0x57   : > { %v1049_v21 = vadd.f32 %v985_v17, %v953_v44  ;;  %v354_v42 = vmul.f32 %v2346_v47, %v2125_v3  ;;  %v1205_v45 = vpack.c.bf16 %v1176_v41, %v1175_v36  ;;  %v1050_v27 = vadd.f32 %v986_v18, %v954_v60  ;;  %v2572_v17 = vld [vmem:[%s2135_s29 + $0x78] sm:$0xff] }
  0x58   : > { %v355_v16 = vmul.f32 %v2349_v28, %v2125_v3  ;;  %v423_v48 = vmul.f32 %v2352_v50, %v2130_v4  ;;  %v424_v35 = vmul.f32 %v2363_v32, %v2130_v4  ;;  %v495_v47 = vmul.f32 %v2452_v9, %v2140_v5  ;;  %v2587_v28 = vld [vmem:[%s2135_s29 + $0x81] sm:$0xff] }
  0x59   : > { %v1081_v34 = vadd.f32 %v1049_v21, %v1017_v61  ;;  %v496_v18 = vmul.f32 %v2461_v54, %v2140_v5  ;;  %1838 = vmatprep.mubr.msk.bf16.mxu0 %vm1235_vm0, %v1205_v45  ;;  %v1082_v50 = vadd.f32 %v1050_v27, %v1018_v10  ;;  %v564_v51 = vmul.f32 %v2464_v40, %v2145_v6 }
  0x5a   : > { %v565_v32 = vmul.f32 %v2471_v56, %v2145_v6  ;;  %v633_v63 = vmul.f32 %v2487_v0, %v2150_v7  ;;  %v634_v8 = vmul.f32 %v2490_v13, %v2150_v7  ;;  %v705_v62 = vmul.f32 %v2158_v11, %v2572_v17 }
  0x5b   : > { %v1113_v26 = vadd.f32 %v1081_v34, %v857_v23  ;;  %v706_v10 = vmul.f32 %v2158_v11, %v2575_v55  ;;  %v1114_v61 = vadd.f32 %v1082_v50, %v858_v39  ;;  %v774_v22 = vmul.f32 %v2163_v12, %v2584_v49 }
  0x5c   : > { %v775_v29 = vmul.f32 %v2163_v12, %v2587_v28  ;;  %v843_v38 = vmul.f32 %v2174_v19, %v2590_v46  ;;  %v844_v52 = vmul.f32 %v2174_v19, %v2600_v15  ;;  %v875_v25 = vadd.f32 %v354_v42, %v285_v1 }
  0x5d   : > { %v1152_v23 = vmul.f32 %v2294_v43, %v1113_v26  ;;  %v876_v53 = vadd.f32 %v355_v16, %v286_v37  ;;  %v1153_v36 = vmul.f32 %v2294_v43, %v1114_v61  ;;  %v907_v44 = vadd.f32 %v495_v47, %v423_v48  ;;  %v2652_v61 = vld [vmem:[%s2135_s29 + $0x142] sm:$0xff] }
  0x5e   : > { %v908_v39 = vadd.f32 %v496_v18, %v424_v35  ;;  %v939_v60 = vadd.f32 %v633_v63, %v564_v51  ;;  %v940_v21 = vadd.f32 %v634_v8, %v565_v32  ;;  %v971_v45 = vadd.f32 %v774_v22, %v705_v62  ;;  %v2633_v51 = vld [vmem:[%s2135_s29 + $0x138] sm:$0xff]  ;;  %v2636_v32 = vld [vmem:[%s2135_s29 + $0x140] sm:$0xff]  ;;  %v3392_v62 = vld [vmem:[#allocation7_spill] sm:$0xff] }
  0x5f   : > { %v1191_v41 = vadd.f32 %v2317_v58, %v1152_v23  ;;  %v972_v27 = vadd.f32 %v775_v29, %v706_v10  ;;  %v1192_v34 = vadd.f32 %v2317_v58, %v1153_v36  ;;  %v1003_v50 = vadd.f32 %v907_v44, %v875_v25  ;;  %3390 = vst [vmem:[#allocation10_spill] sm:$0xff] %v2636_v32  ;;  %v2639_v63 = vld [vmem:[%s2135_s29 + $0x139] sm:$0xff]  ;;  %v2646_v10 = vld [vmem:[%s2135_s29 + $0x141] sm:$0xff] }
  0x60   : > { %v1004_v26 = vadd.f32 %v908_v39, %v876_v53  ;;  %v301_v1 = vmul.f32 %v2397_v30, %v2120_v2  ;;  %v1035_v37 = vadd.f32 %v971_v45, %v939_v60  ;;  %v302_v16 = vmul.f32 %v3384_v31, %v2120_v2  ;;  %3391 = vst [vmem:[#allocation5_spill] sm:$0xff] %v2639_v63  ;;  %v3397_v29 = vld [vmem:[#allocation12_spill] sm:$0xff]  ;;  %v3398_v25 = vld [vmem:[#allocation9_spill] sm:$0xff] }
  0x61   : > { %v1036_v42 = vadd.f32 %v972_v27, %v940_v21  ;;  %v370_v48 = vmul.f32 %v3385_v20, %v2125_v3  ;;  %v1213_v35 = vpack.c.bf16 %v1192_v34, %v1191_v41  ;;  %v371_v47 = vmul.f32 %v3386_v33, %v2125_v3  ;;  %3393 = vst [vmem:[#allocation6_spill] sm:$0xff] %v2646_v10 }
  0x62   : > { %v439_v18 = vmul.f32 %v3387_v14, %v2130_v4  ;;  %v440_v30 = vmul.f32 %v3388_v24, %v2130_v4  ;;  %v1067_v31 = vadd.f32 %v1035_v37, %v1003_v50  ;;  %v511_v20 = vmul.f32 %v2511_v57, %v2140_v5  ;;  %v2649_v14 = vld [vmem:[%s2135_s29 + $0x13a] sm:$0xff]  ;;  %3395 = vst [vmem:[#allocation7_spill] sm:$0xff] %v2652_v61 }
  0x63   : > { %v1068_v8 = vadd.f32 %v1036_v42, %v1004_v26  ;;  %v512_v33 = vmul.f32 %v3392_v62, %v2140_v5  ;;  %3394 = vst [vmem:[#allocation11_spill] sm:$0xff] %v2649_v14  ;;  %1854 = vmatprep.mubr.msk.bf16.mxu1 %vm1235_vm0, %v1213_v35  ;;  %v3396_v24 = vld [vmem:[#allocation8_spill] sm:$0xff]  ;;  %v581_v23 = vmul.f32 %v3397_v29, %v2145_v6 }
  0x64   : > { %v580_v22 = vmul.f32 %v3396_v24, %v2145_v6  ;;  %v649_v53 = vmul.f32 %v3398_v25, %v2150_v7  ;;  %v650_v36 = vmul.f32 %v2551_v59, %v2150_v7  ;;  %v1099_v44 = vadd.f32 %v1067_v31, %v843_v38 }
  0x65   : > { %v1100_v39 = vadd.f32 %v1068_v8, %v844_v52  ;;  %v721_v60 = vmul.f32 %v2158_v11, %v2633_v51  ;;  %v722_v41 = vmul.f32 %v2158_v11, %v2636_v32  ;;  %v790_v21 = vmul.f32 %v2163_v12, %v2639_v63 }
  0x66   : > { %v791_v45 = vmul.f32 %v2163_v12, %v2646_v10  ;;  %v859_v27 = vmul.f32 %v2174_v19, %v2649_v14  ;;  %v860_v34 = vmul.f32 %v2174_v19, %v2652_v61  ;;  %v1138_v38 = vmul.f32 %v2294_v43, %v1099_v44 }
  0x67   : > { %v1139_v52 = vmul.f32 %v2294_v43, %v1100_v39  ;;  %v891_v50 = vadd.f32 %v370_v48, %v301_v1  ;;  %v892_v26 = vadd.f32 %v371_v47, %v302_v16  ;;  %v923_v37 = vadd.f32 %v511_v20, %v439_v18 }
  0x68   : > { %v924_v42 = vadd.f32 %v512_v33, %v440_v30  ;;  %v955_v35 = vadd.f32 %v649_v53, %v580_v22  ;;  %v956_v31 = vadd.f32 %v650_v36, %v581_v23  ;;  %v1177_v8 = vadd.f32 %v2317_v58, %v1138_v38  ;;  %v2686_v30 = vld [vmem:[%s2135_s29 + $0x90] sm:$0xff] }
  0x69   : > { %v1178_v10 = vadd.f32 %v2317_v58, %v1139_v52  ;;  %v987_v14 = vadd.f32 %v790_v21, %v721_v60  ;;  %v988_v63 = vadd.f32 %v791_v45, %v722_v41  ;;  %v1019_v61 = vadd.f32 %v923_v37, %v891_v50  ;;  %v2723_v41 = vld [vmem:[%s2135_s29 + $0x92] sm:$0xff]  ;;  %v2726_v21 = vld [vmem:[%s2135_s29 + $0x9a] sm:$0xff] }
  0x6a   : > { %v1020_v32 = vadd.f32 %v924_v42, %v892_v26  ;;  %v287_v44 = vmul.f32 %v2452_v9, %v2120_v2  ;;  %v288_v1 = vmul.f32 %v2461_v54, %v2120_v2  ;;  %v356_v18 = vmul.f32 %v2464_v40, %v2125_v3 }
  0x6b   : > { %v1206_v16 = vpack.c.bf16 %v1178_v10, %v1177_v8  ;;  %v1051_v48 = vadd.f32 %v987_v14, %v955_v35  ;;  %v1052_v47 = vadd.f32 %v988_v63, %v956_v31  ;;  %v357_v20 = vmul.f32 %v2471_v56, %v2125_v3  ;;  %v2697_v10 = vld [vmem:[%s2135_s29 + $0x98] sm:$0xff] }
  0x6c   : > { %v425_v33 = vmul.f32 %v2487_v0, %v2130_v4  ;;  %v426_v9 = vmul.f32 %v2490_v13, %v2130_v4  ;;  %v497_v54 = vmul.f32 %v2572_v17, %v2140_v5  ;;  %v2700_v63 = vld [vmem:[%s2135_s29 + $0x91] sm:$0xff]  ;;  %v498_v56 = vmul.f32 %v2575_v55, %v2140_v5  ;;  %v2708_v13 = vld [vmem:[%s2135_s29 + $0x99] sm:$0xff] }
  0x6d   : > { %1839 = vmatmul.mubr.msk.bf16.gmra.mrb[4].mxu0 %vm1235_vm0, %v1206_v16  ;;  %v1083_v40 = vadd.f32 %v1051_v48, %v1019_v61  ;;  %v1084_v14 = vadd.f32 %v1052_v47, %v1020_v32  ;;  %v566_v0 = vmul.f32 %v2584_v49, %v2145_v6  ;;  %v567_v22 = vmul.f32 %v2587_v28, %v2145_v6 }
  0x6e   : > { %v635_v23 = vmul.f32 %v2590_v46, %v2150_v7  ;;  %v636_v53 = vmul.f32 %v2600_v15, %v2150_v7  ;;  %v707_v32 = vmul.f32 %v2158_v11, %v2686_v30  ;;  %v708_v39 = vmul.f32 %v2158_v11, %v2697_v10 }
  0x6f   : > { %v1115_v61 = vadd.f32 %v1083_v40, %v859_v27  ;;  %v1116_v36 = vadd.f32 %v1084_v14, %v860_v34  ;;  %v776_v60 = vmul.f32 %v2163_v12, %v2700_v63  ;;  %v777_v45 = vmul.f32 %v2163_v12, %v2708_v13 }
  0x70   : > { %v845_v38 = vmul.f32 %v2174_v19, %v2723_v41  ;;  %v846_v27 = vmul.f32 %v2174_v19, %v2726_v21  ;;  %v877_v34 = vadd.f32 %v356_v18, %v287_v44  ;;  %v878_v26 = vadd.f32 %v357_v20, %v288_v1 }
  0x71   : > { %v1154_v52 = vmul.f32 %v2294_v43, %v1115_v61  ;;  %v1155_v50 = vmul.f32 %v2294_v43, %v1116_v36  ;;  %v909_v37 = vadd.f32 %v497_v54, %v425_v33  ;;  %v910_v42 = vadd.f32 %v498_v56, %v426_v9  ;;  %v2747_v56 = vld [vmem:[%s2135_s29 + $0x150] sm:$0xff]  ;;  %v3403_v61 = vld [vmem:[#allocation5_spill] sm:$0xff]  ;;  %v3404_v36 = vld [vmem:[#allocation6_spill] sm:$0xff] }
  0x72   : > { %v941_v35 = vadd.f32 %v635_v23, %v566_v0  ;;  %v942_v31 = vadd.f32 %v636_v53, %v567_v22  ;;  %v973_v8 = vadd.f32 %v776_v60, %v707_v32  ;;  %v974_v47 = vadd.f32 %v777_v45, %v708_v39  ;;  %v2756_v23 = vld [vmem:[%s2135_s29 + $0x158] sm:$0xff]  ;;  %v3402_v32 = vld [vmem:[#allocation10_spill] sm:$0xff]  ;;  %v3405_v45 = vld [vmem:[#allocation11_spill] sm:$0xff] }
  0x73   : > { %v1193_v16 = vadd.f32 %v2317_v58, %v1154_v52  ;;  %v1194_v48 = vadd.f32 %v2317_v58, %v1155_v50  ;;  %v1005_v40 = vadd.f32 %v909_v37, %v877_v34  ;;  %v1006_v44 = vadd.f32 %v910_v42, %v878_v26  ;;  %3399 = vst [vmem:[#allocation8_spill] sm:$0xff] %v2756_v23  ;;  %v2759_v53 = vld [vmem:[%s2135_s29 + $0x151] sm:$0xff] }
  0x74   : > { %v1037_v18 = vadd.f32 %v973_v8, %v941_v35  ;;  %v303_v1 = vmul.f32 %v2511_v57, %v2120_v2  ;;  %v304_v20 = vmul.f32 %v3392_v62, %v2120_v2  ;;  %v1038_v9 = vadd.f32 %v974_v47, %v942_v31  ;;  %3400 = vst [vmem:[#allocation12_spill] sm:$0xff] %v2759_v53  ;;  %v3406_v52 = vld [vmem:[#allocation7_spill] sm:$0xff]  ;;  %v2787_v8 = vld [vmem:[%s2135_s29 + $0x15a] sm:$0xff] }
  0x75   : > { %v1214_v33 = vpack.c.bf16 %v1194_v48, %v1193_v16  ;;  %v372_v54 = vmul.f32 %v3396_v24, %v2125_v3  ;;  %v373_v14 = vmul.f32 %v3397_v29, %v2125_v3  ;;  %v441_v22 = vmul.f32 %v3398_v25, %v2130_v4  ;;  %v2762_v24 = vld [vmem:[%s2135_s29 + $0x159] sm:$0xff] }
  0x76   : > { %v1069_v0 = vadd.f32 %v1037_v18, %v1005_v40  ;;  %v442_v57 = vmul.f32 %v2551_v59, %v2130_v4  ;;  %v513_v62 = vmul.f32 %v2633_v51, %v2140_v5  ;;  %3401 = vst [vmem:[#allocation9_spill] sm:$0xff] %v2762_v24  ;;  %v1070_v29 = vadd.f32 %v1038_v9, %v1006_v44 }
  0x77   : > { %1855 = vmatmul.mubr.msk.bf16.gmra.mrb[4].mxu1 %vm1235_vm0, %v1214_v33  ;;  %v514_v25 = vmul.f32 %v3402_v32, %v2140_v5  ;;  %v582_v59 = vmul.f32 %v3403_v61, %v2145_v6  ;;  %v583_v39 = vmul.f32 %v3404_v36, %v2145_v6  ;;  %v651_v34 = vmul.f32 %v3405_v45, %v2150_v7 }
  0x78   : > { %v1101_v60 = vadd.f32 %v1069_v0, %v845_v38  ;;  %v652_v50 = vmul.f32 %v3406_v52, %v2150_v7  ;;  %v723_v26 = vmul.f32 %v2158_v11, %v2747_v56  ;;  %v1102_v37 = vadd.f32 %v1070_v29, %v846_v27  ;;  %v2784_v38 = vld [vmem:[%s2135_s29 + $0x152] sm:$0xff] }
  0x79   : > { %v724_v42 = vmul.f32 %v2158_v11, %v2756_v23  ;;  %v792_v35 = vmul.f32 %v2163_v12, %v2759_v53  ;;  %v793_v31 = vmul.f32 %v2163_v12, %v2762_v24  ;;  %3407 = vst [vmem:[#allocation10_spill] sm:$0xff] %v2784_v38  ;;  %v861_v48 = vmul.f32 %v2174_v19, %v2784_v38 }
  0x7a   : > { %v1140_v16 = vmul.f32 %v2294_v43, %v1101_v60  ;;  %v862_v27 = vmul.f32 %v2174_v19, %v2787_v8  ;;  %v893_v47 = vadd.f32 %v372_v54, %v303_v1  ;;  %v1141_v40 = vmul.f32 %v2294_v43, %v1102_v37 }
  0x7b   : > { %v894_v44 = vadd.f32 %v373_v14, %v304_v20  ;;  %v925_v18 = vadd.f32 %v513_v62, %v441_v22  ;;  %v926_v33 = vadd.f32 %v514_v25, %v442_v57  ;;  %v957_v0 = vadd.f32 %v651_v34, %v582_v59  ;;  %v2811_v59 = vld [vmem:[%s2135_s29 + $0xb0] sm:$0xff] }
  0x7c   : > { %v1179_v9 = vadd.f32 %v2317_v58, %v1140_v16  ;;  %v958_v29 = vadd.f32 %v652_v50, %v583_v39  ;;  %v989_v24 = vadd.f32 %v792_v35, %v723_v26  ;;  %v1180_v60 = vadd.f32 %v2317_v58, %v1141_v40  ;;  %v2836_v34 = vld [vmem:[%s2135_s29 + $0xb2] sm:$0xff] }
  0x7d   : > { %v990_v53 = vadd.f32 %v793_v31, %v724_v42  ;;  %v1021_v38 = vadd.f32 %v925_v18, %v893_v47  ;;  %v1022_v23 = vadd.f32 %v926_v33, %v894_v44  ;;  %v289_v20 = vmul.f32 %v2572_v17, %v2120_v2 }
  0x7e   : > { %v1053_v1 = vadd.f32 %v989_v24, %v957_v0  ;;  %v290_v54 = vmul.f32 %v2575_v55, %v2120_v2  ;;  %v358_v14 = vmul.f32 %v2584_v49, %v2125_v3  ;;  %v1207_v22 = vpack.c.bf16 %v1180_v60, %v1179_v9  ;;  %v2808_v24 = vld [vmem:[%s2135_s29 + $0xa8] sm:$0xff] }
  0x7f   : > { %v1054_v57 = vadd.f32 %v990_v53, %v958_v29  ;;  %v359_v62 = vmul.f32 %v2587_v28, %v2125_v3  ;;  %v427_v25 = vmul.f32 %v2590_v46, %v2130_v4  ;;  %v428_v2 = vmul.f32 %v2600_v15, %v2130_v4  ;;  %v2820_v53 = vld [vmem:[%s2135_s29 + $0xa9] sm:$0xff]  ;;  %v2823_v3 = vld [vmem:[%s2135_s29 + $0xb1] sm:$0xff] }
  0x80   : > { %v1085_v17 = vadd.f32 %v1053_v1, %v1021_v38  ;;  %v499_v55 = vmul.f32 %v2686_v30, %v2140_v5  ;;  %v500_v49 = vmul.f32 %v2697_v10, %v2140_v5  ;;  %v2826_v28 = vld [vmem:[%s2135_s29 + $0xaa] sm:$0xff]  ;;  %1842 = vmatprep.mubr.msk.bf16.mxu0 %vm1235_vm0, %v1207_v22  ;;  %v568_v39 = vmul.f32 %v2700_v63, %v2145_v6 }
  0x81   : > { %v1086_v46 = vadd.f32 %v1054_v57, %v1022_v23  ;;  %v569_v4 = vmul.f32 %v2708_v13, %v2145_v6  ;;  %v637_v15 = vmul.f32 %v2723_v41, %v2150_v7  ;;  %v638_v50 = vmul.f32 %v2726_v21, %v2150_v7  ;;  %v2877_v57 = vld [vmem:[%s3303_s1 + $0x2] ss:$0 sm:$0xff] }
  0x82   : > { %v1117_v5 = vadd.f32 %v1085_v17, %v861_v48  ;;  %v709_v26 = vmul.f32 %v2158_v11, %v2808_v24  ;;  %v710_v23 = vmul.f32 %v2158_v11, %v2811_v59  ;;  %v778_v42 = vmul.f32 %v2163_v12, %v2820_v53  ;;  %v2887_v17 = vld [vmem:[%s2135_s29 + $0x170] sm:$0xff] }
  0x83   : > { %v1118_v37 = vadd.f32 %v1086_v46, %v862_v27  ;;  %v779_v6 = vmul.f32 %v2163_v12, %v2823_v3  ;;  %v847_v35 = vmul.f32 %v2174_v19, %v2826_v28  ;;  %v848_v7 = vmul.f32 %v2174_v19, %v2836_v34  ;;  %v2859_v19 = vld [vmem:[%s3303_s1] ss:$0 sm:$0xff]  ;;  %3408 = vst [vmem:[#allocation5_spill] sm:$0xff] %v2887_v17 }
  0x84   : > { %v1156_v31 = vmul.f32 %v2294_v43, %v1117_v5  ;;  %v879_v38 = vadd.f32 %v358_v14, %v289_v20  ;;  %v880_v16 = vadd.f32 %v359_v62, %v290_v54  ;;  %v911_v11 = vadd.f32 %v499_v55, %v427_v25  ;;  %v2868_v54 = vld [vmem:[%s3303_s1 + $0x1] ss:$0 sm:$0xff]  ;;  %v2884_v25 = vld [vmem:[%s2135_s29 + $0x168] sm:$0xff]  ;;  %v3414_v5 = vld [vmem:[#allocation12_spill] sm:$0xff] }
  0x85   : > { %v1157_v48 = vmul.f32 %v2294_v43, %v1118_v37  ;;  %v912_v27 = vadd.f32 %v500_v49, %v428_v2  ;;  %v943_v47 = vadd.f32 %v637_v15, %v568_v39  ;;  %v944_v44 = vadd.f32 %v638_v50, %v569_v4  ;;  %v2905_v39 = vld [vmem:[%s2135_s29 + $0x16a] sm:$0xff]  ;;  %v2908_v4 = vld [vmem:[%s2135_s29 + $0x172] sm:$0xff]  ;;  %v2914_v15 = vld [vmem:[%s3303_s1 + $0x4] ss:$0 sm:$0xff] }
  0x86   : > { %v1195_v40 = vadd.f32 %v2317_v58, %v1156_v31  ;;  %v975_v18 = vadd.f32 %v778_v42, %v709_v26  ;;  %v976_v12 = vadd.f32 %v779_v6, %v710_v23  ;;  %v1007_v9 = vadd.f32 %v911_v11, %v879_v38  ;;  %3412 = vst [vmem:[#allocation7_spill] sm:$0xff] %v2905_v39  ;;  %v3415_v26 = vld [vmem:[#allocation9_spill] sm:$0xff]  ;;  %v3416_v42 = vld [vmem:[#allocation10_spill] sm:$0xff] }
  0x87   : > { %v1196_v33 = vadd.f32 %v2317_v58, %v1157_v48  ;;  %v1008_v0 = vadd.f32 %v912_v27, %v880_v16  ;;  %v305_v29 = vmul.f32 %v2859_v19, %v2633_v51  ;;  %v306_v20 = vmul.f32 %v2859_v19, %v3402_v32  ;;  %v2923_v37 = vld [vmem:[%s3303_s1 + $0x5] ss:$0 sm:$0xff]  ;;  %v2932_v48 = vld [vmem:[%s3303_s1 + $0x6] ss:$0 sm:$0xff] }
  0x88   : > { %v1039_v60 = vadd.f32 %v975_v18, %v943_v47  ;;  %v1040_v1 = vadd.f32 %v976_v12, %v944_v44  ;;  %v374_v14 = vmul.f32 %v2868_v54, %v3403_v61  ;;  %v375_v51 = vmul.f32 %v2868_v54, %v3404_v36  ;;  %v2890_v61 = vld [vmem:[%s2135_s29 + $0x169] sm:$0xff]  ;;  %v2895_v36 = vld [vmem:[%s3303_s1 + $0x3] ss:$0 sm:$0xff]  ;;  %v2941_v47 = vld [vmem:[%s3303_s1 + $0x7] ss:$0 sm:$0xff] }
  0x89   : > { %v1215_v22 = vpack.c.bf16 %v1196_v33, %v1195_v40  ;;  %v443_v32 = vmul.f32 %v2877_v57, %v3405_v45  ;;  %v444_v62 = vmul.f32 %v2877_v57, %v3406_v52  ;;  %3409 = vst [vmem:[#allocation6_spill] sm:$0xff] %v2890_v61  ;;  %v515_v49 = vmul.f32 %v2895_v36, %v2747_v56  ;;  %v3410_v45 = vld [vmem:[#allocation8_spill] sm:$0xff]  ;;  %v2950_v40 = vld [vmem:[%s3303_s1 + $0x8] ss:$0 sm:$0xff] }
  0x8a   : > { %v1071_v2 = vadd.f32 %v1039_v60, %v1007_v9  ;;  %v1072_v55 = vadd.f32 %v1040_v1, %v1008_v0  ;;  %v516_v46 = vmul.f32 %v2895_v36, %v3410_v45  ;;  %v2902_v52 = vld [vmem:[%s2135_s29 + $0x171] sm:$0xff]  ;;  %3413 = vst [vmem:[#allocation8_spill] sm:$0xff] %v2908_v4  ;;  %v584_v50 = vmul.f32 %v2914_v15, %v3414_v5 }
  0x8b   : > { %3411 = vst [vmem:[#allocation11_spill] sm:$0xff] %v2902_v52  ;;  %1858 = vmatprep.mubr.msk.bf16.mxu1 %vm1235_vm0, %v1215_v22  ;;  %v585_v23 = vmul.f32 %v2914_v15, %v3415_v26  ;;  %v653_v6 = vmul.f32 %v2923_v37, %v3416_v42  ;;  %v654_v31 = vmul.f32 %v2923_v37, %v2787_v8 }
  0x8c   : > { %v1103_v38 = vadd.f32 %v1071_v2, %v847_v35  ;;  %v1104_v16 = vadd.f32 %v1072_v55, %v848_v7  ;;  %v725_v11 = vmul.f32 %v2932_v48, %v2884_v25  ;;  %v726_v27 = vmul.f32 %v2932_v48, %v2887_v17 }
  0x8d   : > { %v794_v35 = vmul.f32 %v2941_v47, %v2890_v61  ;;  %v795_v7 = vmul.f32 %v2941_v47, %v2902_v52  ;;  %v863_v44 = vmul.f32 %v2950_v40, %v2905_v39  ;;  %v864_v18 = vmul.f32 %v2950_v40, %v2908_v4 }
  0x8e   : > { %v1142_v12 = vmul.f32 %v2294_v43, %v1103_v38  ;;  %v1143_v33 = vmul.f32 %v2294_v43, %v1104_v16  ;;  %v895_v9 = vadd.f32 %v374_v14, %v305_v29  ;;  %v896_v0 = vadd.f32 %v375_v51, %v306_v20  ;;  %v3004_v16 = vld [vmem:[%s2135_s29 + $0xc2] sm:$0xff] }
  0x8f   : > { %v927_v60 = vadd.f32 %v515_v49, %v443_v32  ;;  %v928_v1 = vadd.f32 %v516_v46, %v444_v62  ;;  %v959_v22 = vadd.f32 %v653_v6, %v584_v50  ;;  %v960_v2 = vadd.f32 %v654_v31, %v585_v23  ;;  %v2978_v46 = vld [vmem:[%s2135_s29 + $0xc8] sm:$0xff] }
  0x90   : > { %v1181_v55 = vadd.f32 %v2317_v58, %v1142_v12  ;;  %v1182_v52 = vadd.f32 %v2317_v58, %v1143_v33  ;;  %v991_v39 = vadd.f32 %v794_v35, %v725_v11  ;;  %v992_v61 = vadd.f32 %v795_v7, %v726_v27  ;;  %v2967_v58 = vld [vmem:[%s2135_s29 + $0xc0] sm:$0xff]  ;;  %v3007_v11 = vld [vmem:[%s2135_s29 + $0xca] sm:$0xff] }
  0x91   : > { %v1023_v4 = vadd.f32 %v927_v60, %v895_v9  ;;  %v1024_v17 = vadd.f32 %v928_v1, %v896_v0  ;;  %v291_v43 = vmul.f32 %v2859_v19, %v2686_v30  ;;  %v292_v29 = vmul.f32 %v2859_v19, %v2697_v10 }
  0x92   : > { %v1208_v20 = vpack.c.bf16 %v1182_v52, %v1181_v55  ;;  %v1055_v14 = vadd.f32 %v991_v39, %v959_v22  ;;  %v1056_v51 = vadd.f32 %v992_v61, %v960_v2  ;;  %v360_v32 = vmul.f32 %v2868_v54, %v2700_v63  ;;  %v2981_v61 = vld [vmem:[%s2135_s29 + $0xc1] sm:$0xff]  ;;  %v3025_v55 = vld [vmem:[%s3305_s3] ss:$0 sm:$0xff] }
  0x93   : > { %v361_v62 = vmul.f32 %v2868_v54, %v2708_v13  ;;  %v429_v49 = vmul.f32 %v2877_v57, %v2723_v41  ;;  %v430_v30 = vmul.f32 %v2877_v57, %v2726_v21  ;;  %v501_v10 = vmul.f32 %v2895_v36, %v2808_v24  ;;  %v2989_v21 = vld [vmem:[%s2135_s29 + $0xc9] sm:$0xff] }
  0x94   : > { %1843 = vmatmul.mubr.msk.bf16.gmra.mrb[8].mxu0 %vm1235_vm0, %v1208_v20  ;;  %v1087_v63 = vadd.f32 %v1055_v14, %v1023_v4  ;;  %v1088_v52 = vadd.f32 %v1056_v51, %v1024_v17  ;;  %v502_v13 = vmul.f32 %v2895_v36, %v2811_v59  ;;  %v570_v41 = vmul.f32 %v2914_v15, %v2820_v53 }
  0x95   : > { %v571_v39 = vmul.f32 %v2914_v15, %v2823_v3  ;;  %v639_v50 = vmul.f32 %v2923_v37, %v2826_v28  ;;  %v640_v23 = vmul.f32 %v2923_v37, %v2836_v34  ;;  %v711_v17 = vmul.f32 %v2932_v48, %v2967_v58 }
  0x96   : > { %v1119_v4 = vadd.f32 %v1087_v63, %v863_v44  ;;  %v1120_v6 = vadd.f32 %v1088_v52, %v864_v18  ;;  %v712_v31 = vmul.f32 %v2932_v48, %v2978_v46  ;;  %v780_v38 = vmul.f32 %v2941_v47, %v2981_v61  ;;  %v3018_v18 = vld [vmem:[%s3304_s2] ss:$0 sm:$0xff] }
  0x97   : > { %v781_v27 = vmul.f32 %v2941_v47, %v2989_v21  ;;  %v849_v35 = vmul.f32 %v2950_v40, %v3004_v16  ;;  %v850_v7 = vmul.f32 %v2950_v40, %v3007_v11  ;;  %v881_v44 = vadd.f32 %v360_v32, %v291_v43 }
  0x98   : > { %v1158_v12 = vmul.f32 %v3018_v18, %v1119_v4  ;;  %v1159_v33 = vmul.f32 %v3018_v18, %v1120_v6  ;;  %v882_v9 = vadd.f32 %v361_v62, %v292_v29  ;;  %v913_v0 = vadd.f32 %v501_v10, %v429_v49  ;;  %v3421_v4 = vld [vmem:[#allocation6_spill] sm:$0xff]  ;;  %v3422_v6 = vld [vmem:[#allocation11_spill] sm:$0xff] }
  0x99   : > { %v914_v60 = vadd.f32 %v502_v13, %v430_v30  ;;  %v945_v1 = vadd.f32 %v639_v50, %v570_v41  ;;  %v946_v22 = vadd.f32 %v640_v23, %v571_v39  ;;  %v977_v2 = vadd.f32 %v780_v38, %v711_v17  ;;  %v3038_v13 = vld [vmem:[%s2135_s29 + $0x180] sm:$0xff]  ;;  %v3047_v50 = vld [vmem:[%s2135_s29 + $0x188] sm:$0xff] }
  0x9a   : > { %v1197_v43 = vadd.f32 %v3025_v55, %v1158_v12  ;;  %v1198_v20 = vadd.f32 %v3025_v55, %v1159_v33  ;;  %v978_v14 = vadd.f32 %v781_v27, %v712_v31  ;;  %v1009_v51 = vadd.f32 %v913_v0, %v881_v44  ;;  %3417 = vst [vmem:[#allocation12_spill] sm:$0xff] %v3047_v50  ;;  %v3050_v23 = vld [vmem:[%s2135_s29 + $0x181] sm:$0xff]  ;;  %v3423_v27 = vld [vmem:[#allocation7_spill] sm:$0xff]  ;;  %v3424_v12 = vld [vmem:[#allocation8_spill] sm:$0xff] }
  0x9b   : > { %v1010_v29 = vadd.f32 %v914_v60, %v882_v9  ;;  %v1041_v32 = vadd.f32 %v977_v2, %v945_v1  ;;  %v307_v62 = vmul.f32 %v2859_v19, %v2747_v56  ;;  %v308_v49 = vmul.f32 %v2859_v19, %v3410_v45  ;;  %3418 = vst [vmem:[#allocation9_spill] sm:$0xff] %v3050_v23  ;;  %v3420_v17 = vld [vmem:[#allocation5_spill] sm:$0xff]  ;;  %v3078_v2 = vld [vmem:[%s2135_s29 + $0x18a] sm:$0xff] }
  0x9c   : > { %v1216_v30 = vpack.c.bf16 %v1198_v20, %v1197_v43  ;;  %v1042_v10 = vadd.f32 %v978_v14, %v946_v22  ;;  %v376_v63 = vmul.f32 %v2868_v54, %v3414_v5  ;;  %v377_v52 = vmul.f32 %v2868_v54, %v3415_v26  ;;  %v3053_v5 = vld [vmem:[%s2135_s29 + $0x189] sm:$0xff] }
  0x9d   : > { %v1073_v41 = vadd.f32 %v1041_v32, %v1009_v51  ;;  %v445_v39 = vmul.f32 %v2877_v57, %v3416_v42  ;;  %v446_v56 = vmul.f32 %v2877_v57, %v2787_v8  ;;  %v517_v45 = vmul.f32 %v2895_v36, %v2884_v25  ;;  %3419 = vst [vmem:[#allocation10_spill] sm:$0xff] %v3053_v5 }
  0x9e   : > { %1859 = vmatmul.mubr.msk.bf16.gmra.mrb[8].mxu1 %vm1235_vm0, %v1216_v30  ;;  %v1074_v26 = vadd.f32 %v1042_v10, %v1010_v29  ;;  %v518_v42 = vmul.f32 %v2895_v36, %v3420_v17  ;;  %v586_v8 = vmul.f32 %v2914_v15, %v3421_v4  ;;  %v587_v31 = vmul.f32 %v2914_v15, %v3422_v6 }
  0x9f   : > { %v1105_v38 = vadd.f32 %v1073_v41, %v849_v35  ;;  %v655_v44 = vmul.f32 %v2923_v37, %v3423_v27  ;;  %v656_v33 = vmul.f32 %v2923_v37, %v3424_v12  ;;  %v727_v9 = vmul.f32 %v2932_v48, %v3038_v13  ;;  %v3075_v35 = vld [vmem:[%s2135_s29 + $0x182] sm:$0xff] }
  0xa0   : > { %v1106_v0 = vadd.f32 %v1074_v26, %v850_v7  ;;  %v728_v60 = vmul.f32 %v2932_v48, %v3047_v50  ;;  %v796_v1 = vmul.f32 %v2941_v47, %v3050_v23  ;;  %v797_v22 = vmul.f32 %v2941_v47, %v3053_v5  ;;  %3425 = vst [vmem:[#allocation5_spill] sm:$0xff] %v3075_v35 }
  0xa1   : > { %v1144_v43 = vmul.f32 %v3018_v18, %v1105_v38  ;;  %v865_v20 = vmul.f32 %v2950_v40, %v3075_v35  ;;  %v866_v7 = vmul.f32 %v2950_v40, %v3078_v2  ;;  %v897_v14 = vadd.f32 %v376_v63, %v307_v62 }
  0xa2   : > { %v1145_v51 = vmul.f32 %v3018_v18, %v1106_v0  ;;  %v898_v29 = vadd.f32 %v377_v52, %v308_v49  ;;  %v929_v32 = vadd.f32 %v517_v45, %v445_v39  ;;  %v930_v30 = vadd.f32 %v518_v42, %v446_v56  ;;  %v1768_v0 = vld [vmem:[%s2135_s29 + $0xe2] sm:$0xff] }
  0xa3   : > { %v1183_v10 = vadd.f32 %v3025_v55, %v1144_v43  ;;  %v961_v41 = vadd.f32 %v655_v44, %v586_v8  ;;  %v962_v26 = vadd.f32 %v656_v33, %v587_v31  ;;  %v993_v5 = vadd.f32 %v796_v1, %v727_v9  ;;  %v1702_v8 = vld [vmem:[%s2135_s29 + $0xe0] sm:$0xff] }
  0xa4   : > { %v1184_v38 = vadd.f32 %v3025_v55, %v1145_v51  ;;  %v994_v23 = vadd.f32 %v797_v22, %v728_v60  ;;  %v1025_v35 = vadd.f32 %v929_v32, %v897_v14  ;;  %v1026_v50 = vadd.f32 %v930_v30, %v898_v29  ;;  %v1735_v44 = vld [vmem:[%s2135_s29 + $0xe1] sm:$0xff] }
  0xa5   : > { %v1057_v62 = vadd.f32 %v993_v5, %v961_v41  ;;  %v293_v49 = vmul.f32 %v2859_v19, %v2808_v24  ;;  %v294_v63 = vmul.f32 %v2859_v19, %v2811_v59  ;;  %v362_v52 = vmul.f32 %v2868_v54, %v2820_v53  ;;  %v1701_v5 = vld [vmem:[%s2135_s29 + $0xd8] sm:$0xff] }
  0xa6   : > { %v1209_v39 = vpack.c.bf16 %v1184_v38, %v1183_v10  ;;  %v1058_v56 = vadd.f32 %v994_v23, %v962_v26  ;;  %v363_v45 = vmul.f32 %v2868_v54, %v2823_v3  ;;  %v431_v42 = vmul.f32 %v2877_v57, %v2826_v28  ;;  %v1734_v23 = vld [vmem:[%s2135_s29 + $0xd9] sm:$0xff] }
  0xa7   : > { %v1089_v31 = vadd.f32 %v1057_v62, %v1025_v35  ;;  %v432_v24 = vmul.f32 %v2877_v57, %v2836_v34  ;;  %v503_v59 = vmul.f32 %v2895_v36, %v2967_v58  ;;  %v504_v53 = vmul.f32 %v2895_v36, %v2978_v46  ;;  %v1767_v33 = vld [vmem:[%s2135_s29 + $0xda] sm:$0xff] }
  0xa8   : > { %1846 = vmatprep.mubr.msk.bf16.mxu0 %vm1235_vm0, %v1209_v39  ;;  %v1090_v3 = vadd.f32 %v1058_v56, %v1026_v50  ;;  %v572_v28 = vmul.f32 %v2914_v15, %v2981_v61  ;;  %v573_v9 = vmul.f32 %v2914_v15, %v2989_v21  ;;  %v641_v34 = vmul.f32 %v2923_v37, %v3004_v16 }
  0xa9   : > { %v1121_v58 = vadd.f32 %v1089_v31, %v865_v20  ;;  %v642_v46 = vmul.f32 %v2923_v37, %v3007_v11  ;;  %v713_v60 = vmul.f32 %v2932_v48, %v1701_v5  ;;  %v714_v1 = vmul.f32 %v2932_v48, %v1702_v8  ;;  %v1718_v8 = vld [vmem:[%s2135_s29 + $0x1a0] sm:$0xff] }
  0xaa   : > { %v1122_v22 = vadd.f32 %v1090_v3, %v866_v7  ;;  %v782_v50 = vmul.f32 %v2941_v47, %v1734_v23  ;;  %v783_v61 = vmul.f32 %v2941_v47, %v1735_v44  ;;  %v851_v35 = vmul.f32 %v2950_v40, %v1767_v33 }
  0xab   : > { %v1160_v21 = vmul.f32 %v3018_v18, %v1121_v58  ;;  %v852_v16 = vmul.f32 %v2950_v40, %v1768_v0  ;;  %v883_v43 = vadd.f32 %v362_v52, %v293_v49  ;;  %v884_v20 = vadd.f32 %v363_v45, %v294_v63  ;;  %v1783_v0 = vld [vmem:[%s2135_s29 + $0x19a] sm:$0xff] }
  0xac   : > { %v1161_v14 = vmul.f32 %v3018_v18, %v1122_v22  ;;  %v915_v11 = vadd.f32 %v503_v59, %v431_v42  ;;  %v916_v51 = vadd.f32 %v504_v53, %v432_v24  ;;  %v947_v29 = vadd.f32 %v641_v34, %v572_v28  ;;  %v1750_v59 = vld [vmem:[%s2135_s29 + $0x199] sm:$0xff]  ;;  %v1751_v53 = vld [vmem:[%s2135_s29 + $0x1a1] sm:$0xff] }
  0xad   : > { %v1199_v32 = vadd.f32 %v3025_v55, %v1160_v21  ;;  %v948_v7 = vadd.f32 %v642_v46, %v573_v9  ;;  %v979_v30 = vadd.f32 %v782_v50, %v713_v60  ;;  %v980_v10 = vadd.f32 %v783_v61, %v714_v1  ;;  %v1784_v60 = vld [vmem:[%s2135_s29 + $0x1a2] sm:$0xff] }
  0xae   : > { %v1200_v41 = vadd.f32 %v3025_v55, %v1161_v14  ;;  %v1011_v26 = vadd.f32 %v915_v11, %v883_v43  ;;  %v1012_v38 = vadd.f32 %v916_v51, %v884_v20  ;;  %v309_v62 = vmul.f32 %v2859_v19, %v2884_v25  ;;  %v1717_v25 = vld [vmem:[%s2135_s29 + $0x198] sm:$0xff]  ;;  %s229_s29 = sand.u32 1, %s2003_s19  }
  0xaf   : > { %v1043_v49 = vadd.f32 %v979_v30, %v947_v29  ;;  %v1044_v63 = vadd.f32 %v980_v10, %v948_v7  ;;  %v310_v52 = vmul.f32 %v2859_v19, %v3420_v17  ;;  %v378_v39 = vmul.f32 %v2868_v54, %v3421_v4  ;;  %v3426_v17 = vld [vmem:[#allocation12_spill] sm:$0xff]  ;;  %s1583_s17 = sshll.u32 %s229_s29, 8  ;;  %s3256_s21 = scalar_lea.sflag [#allocation3], %s229_s29 }
  0xb0   : > { %v1217_v56 = vpack.c.bf16 %v1200_v41, %v1199_v32  ;;  %v379_v45 = vmul.f32 %v2868_v54, %v3422_v6  ;;  %v447_v42 = vmul.f32 %v2877_v57, %v3423_v27  ;;  %v448_v5 = vmul.f32 %v2877_v57, %v3424_v12  ;;  %v3427_v54 = vld [vmem:[#allocation9_spill] sm:$0xff]  ;;  %v3428_v57 = vld [vmem:[#allocation10_spill] sm:$0xff]  ;;  %s3179_s24 = scalar_lea.vmem [#allocation2], %s1583_s17 }
  0xb1   : > { %v1075_v31 = vadd.f32 %v1043_v49, %v1011_v26  ;;  %v1076_v24 = vadd.f32 %v1044_v63, %v1012_v38  ;;  %v519_v19 = vmul.f32 %v2895_v36, %v3038_v13  ;;  %v520_v4 = vmul.f32 %v2895_v36, %v3426_v17  ;;  %v3429_v12 = vld [vmem:[#allocation5_spill] sm:$0xff]  ;;  %s1495_s27 = sshll.u32 %s3179_s24, 4  ;;  %s3246_s27 = int_to_ptr.vmem [resolvable:$true] %s1495_s27 }
  0xb2   : > { %1862 = vmatprep.mubr.msk.bf16.mxu1 %vm1235_vm0, %v1217_v56  ;;  %v588_v6 = vmul.f32 %v2914_v15, %v3427_v54  ;;  %v589_v27 = vmul.f32 %v2914_v15, %v3428_v57  ;;  %v657_v23 = vmul.f32 %v2923_v37, %v3429_v12  ;;  %v658_v13 = vmul.f32 %v2923_v37, %v3078_v2  ;;  %s1941_s10 = scalar_lea.vmem %s3246_s27, 4096  ;;  %p1948_p1 = scmp.lt.s32.totalorder %s3246_s27, %s1946_s13 }
  0xb3   : > { %v1107_v44 = vadd.f32 %v1075_v31, %v851_v35  ;;  %v1108_v36 = vadd.f32 %v1076_v24, %v852_v16  ;;  %v729_v33 = vmul.f32 %v2932_v48, %v1717_v25  ;;  %v730_v3 = vmul.f32 %v2932_v48, %v1718_v8  ;;  %p1942_p12 = scmp.ne.s32.totalorder %s3246_s27, %s1941_s10  ;;  %p1949_p2 = scmp.lt.s32.totalorder %s1947_s12, %s1941_s10 }
  0xb4   : > { %v798_v28 = vmul.f32 %v2941_v47, %v1750_v59  ;;  %v799_v9 = vmul.f32 %v2941_v47, %v1751_v53  ;;  %v899_v58 = vadd.f32 %v378_v39, %v309_v62  ;;  %v900_v46 = vadd.f32 %v379_v45, %v310_v52 }
  0xb5   : > { %v1146_v34 = vmul.f32 %v3018_v18, %v1107_v44  ;;  %v1147_v15 = vmul.f32 %v3018_v18, %v1108_v36  ;;  %v931_v1 = vadd.f32 %v519_v19, %v447_v42  ;;  %v932_v37 = vadd.f32 %v520_v4, %v448_v5  ;;  %p1943_p13 = pnand %p1942_p12, %p2094_p4  ;;  %p1950_p3 = por %p1949_p2, %p1948_p1 }
  0xb6   : > { %v963_v2 = vadd.f32 %v657_v23, %v588_v6  ;;  %v964_v22 = vadd.f32 %v658_v13, %v589_v27  ;;  %v995_v61 = vadd.f32 %v798_v28, %v729_v33  ;;  %v996_v35 = vadd.f32 %v799_v9, %v730_v3 }
  0xb7   : > { %v1185_v50 = vadd.f32 %v3025_v55, %v1146_v34  ;;  %v1186_v48 = vadd.f32 %v3025_v55, %v1147_v15  ;;  %v867_v47 = vmul.f32 %v2950_v40, %v1783_v0  ;;  %v1027_v21 = vadd.f32 %v931_v1, %v899_v58  ;;  %p1944_p0 = pneg %p1943_p13 }
  0xb8   : > { %v1028_v16 = vadd.f32 %v932_v37, %v900_v46  ;;  %v868_v20 = vmul.f32 %v2950_v40, %v1784_v60  ;;  %v1059_v14 = vadd.f32 %v995_v61, %v963_v2  ;;  %v1060_v11 = vadd.f32 %v996_v35, %v964_v22 }
  0xb9   : > { %v1210_v43 = vpack.c.bf16 %v1186_v48, %v1185_v50  ;;  %p1951_p5 = pnand %p1950_p3, %p1944_p0 }
  0xba   : > { %v1091_v51 = vadd.f32 %v1059_v14, %v1027_v21  ;;  %v1092_v29 = vadd.f32 %v1060_v11, %v1028_v16 }
  0xbb   : > { %1847 = vmatmul.mubr.msk.bf16.gmra.mrb[12].mxu0 %vm1235_vm0, %v1210_v43 }
  0xbc   : > { %v1123_v32 = vadd.f32 %v1091_v51, %v867_v47  ;;  %v1124_v7 = vadd.f32 %v1092_v29, %v868_v20 }
  0xbe   : > { %v1162_v30 = vmul.f32 %v3018_v18, %v1123_v32  ;;  %v1163_v10 = vmul.f32 %v3018_v18, %v1124_v7 }
  0xc0   : > { %v1201_v41 = vadd.f32 %v3025_v55, %v1162_v30  ;;  %v1202_v26 = vadd.f32 %v3025_v55, %v1163_v10 }
  0xc2   : > { %v1218_v38 = vpack.c.bf16 %v1202_v26, %v1201_v41 }
  0xc4   : > { %1863 = vmatmul.mubr.msk.bf16.gmra.mrb[12].mxu1 %vm1235_vm0, %v1218_v38 }
 0x119   : > { %v1836_v40 = vpop.f32.mrb[0].mxu0 }
 0x11a   : > { %1448 = vst.msk [vmem:[%s3179_s24 + $0x10] sm:$0xff] %vm1445_vm1, %v1836_v40  ;;  %v1318_v18 = vpop.f32.mrb[1].mxu0 }
 0x11b   : > { %1446 = vst.msk [vmem:[%s3179_s24] sm:$0xff] %vm1445_vm1, %v1318_v18  ;;  %v1837_v55 = vpop.f32.mrb[2].mxu0 }
 0x11c   : > { %1449 = vst.msk [vmem:[%s3179_s24 + $0x18] sm:$0xff] %vm1445_vm1, %v1837_v55  ;;  %v1321_v62 = vpop.f32.mrb[3].mxu0 }
 0x11d   : > { %1447 = vst.msk [vmem:[%s3179_s24 + $0x8] sm:$0xff] %vm1445_vm1, %v1321_v62 }
 0x123   : > { %v1852_v49 = vpop.f32.mrb[0].mxu1 }
 0x124   : > { %1464 = vst.msk [vmem:[%s3179_s24 + $0x90] sm:$0xff] %vm1445_vm1, %v1852_v49  ;;  %v1382_v63 = vpop.f32.mrb[1].mxu1 }
 0x125   : > { %1462 = vst.msk [vmem:[%s3179_s24 + $0x80] sm:$0xff] %vm1445_vm1, %v1382_v63  ;;  %v1853_v52 = vpop.f32.mrb[2].mxu1 }
 0x126   : > { %1465 = vst.msk [vmem:[%s3179_s24 + $0x98] sm:$0xff] %vm1445_vm1, %v1853_v52  ;;  %v1385_v39 = vpop.f32.mrb[3].mxu1 }
 0x127   : > { %1463 = vst.msk [vmem:[%s3179_s24 + $0x88] sm:$0xff] %vm1445_vm1, %v1385_v39 }
 0x140   : > { %v1840_v56 = vpop.f32.mrb[4].mxu0 }
 0x141   : > { %1452 = vst.msk [vmem:[%s3179_s24 + $0x30] sm:$0xff] %vm1445_vm1, %v1840_v56  ;;  %v1334_v45 = vpop.f32.mrb[5].mxu0 }
 0x142   : > { %1450 = vst.msk [vmem:[%s3179_s24 + $0x20] sm:$0xff] %vm1445_vm1, %v1334_v45  ;;  %v1841_v42 = vpop.f32.mrb[6].mxu0 }
 0x143   : > { %1453 = vst.msk [vmem:[%s3179_s24 + $0x38] sm:$0xff] %vm1445_vm1, %v1841_v42  ;;  %v1337_v5 = vpop.f32.mrb[7].mxu0 }
 0x144   : > { %1451 = vst.msk [vmem:[%s3179_s24 + $0x28] sm:$0xff] %vm1445_vm1, %v1337_v5 }
 0x14a   : > { %v1856_v25 = vpop.f32.mrb[4].mxu1 }
 0x14b   : > { %1468 = vst.msk [vmem:[%s3179_s24 + $0xb0] sm:$0xff] %vm1445_vm1, %v1856_v25  ;;  %v1398_v8 = vpop.f32.mrb[5].mxu1 }
 0x14c   : > { %1466 = vst.msk [vmem:[%s3179_s24 + $0xa0] sm:$0xff] %vm1445_vm1, %v1398_v8  ;;  %v1857_v31 = vpop.f32.mrb[6].mxu1 }
 0x14d   : > { %1469 = vst.msk [vmem:[%s3179_s24 + $0xb8] sm:$0xff] %vm1445_vm1, %v1857_v31  ;;  %v1401_v24 = vpop.f32.mrb[7].mxu1 }
 0x14e   : > { %1467 = vst.msk [vmem:[%s3179_s24 + $0xa8] sm:$0xff] %vm1445_vm1, %v1401_v24 }
 0x167   : > { %v1844_v19 = vpop.f32.mrb[8].mxu0 }
 0x168   : > { %1456 = vst.msk [vmem:[%s3179_s24 + $0x50] sm:$0xff] %vm1445_vm1, %v1844_v19  ;;  %v1350_v17 = vpop.f32.mrb[9].mxu0 }
 0x169   : > { %1454 = vst.msk [vmem:[%s3179_s24 + $0x40] sm:$0xff] %vm1445_vm1, %v1350_v17  ;;  %v1845_v4 = vpop.f32.mrb[10].mxu0 }
 0x16a   : > { %1457 = vst.msk [vmem:[%s3179_s24 + $0x58] sm:$0xff] %vm1445_vm1, %v1845_v4  ;;  %v1353_v59 = vpop.f32.mrb[11].mxu0 }
 0x16b   : > { %1455 = vst.msk [vmem:[%s3179_s24 + $0x48] sm:$0xff] %vm1445_vm1, %v1353_v59 }
 0x171   : > { %v1860_v53 = vpop.f32.mrb[8].mxu1 }
 0x172   : > { %1472 = vst.msk [vmem:[%s3179_s24 + $0xd0] sm:$0xff] %vm1445_vm1, %v1860_v53  ;;  %v1414_v54 = vpop.f32.mrb[9].mxu1 }
 0x173   : > { %1470 = vst.msk [vmem:[%s3179_s24 + $0xc0] sm:$0xff] %vm1445_vm1, %v1414_v54  ;;  %v1861_v6 = vpop.f32.mrb[10].mxu1 }
 0x174   : > { %1473 = vst.msk [vmem:[%s3179_s24 + $0xd8] sm:$0xff] %vm1445_vm1, %v1861_v6  ;;  %v1417_v57 = vpop.f32.mrb[11].mxu1 }
 0x175   : > { %1471 = vst.msk [vmem:[%s3179_s24 + $0xc8] sm:$0xff] %vm1445_vm1, %v1417_v57 }
 0x18e   : > { %v1848_v27 = vpop.f32.mrb[12].mxu0 }
 0x18f   : > { %1460 = vst.msk [vmem:[%s3179_s24 + $0x70] sm:$0xff] %vm1445_vm1, %v1848_v27  ;;  %v1366_v12 = vpop.f32.mrb[13].mxu0 }
 0x190   : > { %1458 = vst.msk [vmem:[%s3179_s24 + $0x60] sm:$0xff] %vm1445_vm1, %v1366_v12  ;;  %v1849_v23 = vpop.f32.mrb[14].mxu0 }
 0x191   : > { %1461 = vst.msk [vmem:[%s3179_s24 + $0x78] sm:$0xff] %vm1445_vm1, %v1849_v23  ;;  %v1369_v13 = vpop.f32.mrb[15].mxu0 }
 0x192   : > { %1459 = vst.msk [vmem:[%s3179_s24 + $0x68] sm:$0xff] %vm1445_vm1, %v1369_v13 }
 0x197   : > { %v1864_v44 = vpop.f32.mrb[12].mxu1 }
 0x198   : > { %1476 = vst.msk [vmem:[%s3179_s24 + $0xf0] sm:$0xff] %vm1445_vm1, %v1864_v44  ;;  %v1430_v36 = vpop.f32.mrb[13].mxu1 }
 0x199   : > { %1474 = vst.msk [vmem:[%s3179_s24 + $0xe0] sm:$0xff] %vm1445_vm1, %v1430_v36  ;;  %v1865_v33 = vpop.f32.mrb[14].mxu1 }
 0x19a   : > { %1477 = vst.msk [vmem:[%s3179_s24 + $0xf8] sm:$0xff] %vm1445_vm1, %v1865_v33  ;;  %v1433_v3 = vpop.f32.mrb[15].mxu1 }
 0x19b   : > { %1475 = vst.msk [vmem:[%s3179_s24 + $0xe8] sm:$0xff] %vm1445_vm1, %v1433_v3 }
 0x19c   : > { %1954 = shalt.err (!%p1951_p5)
}
 0x19d   : > { %s1955_s14 = scalar_lea.hbm %s3244_s9, 4096  ;;  %s1959_s29 = scalar_lea.hbm %s3307_s5, 8192 }
 0x19e   : > { %p1956_p6 = scmp.ne.s32.totalorder %s3244_s9, %s1955_s14  ;;  %p1960_p10 = scmp.lt.u32.totalorder %s3244_s9, %s3307_s5 }
 0x19f   : > { %p1961_p11 = scmp.lt.u32.totalorder %s1959_s29, %s1955_s14  ;;  %p1963_p13 = scmp.lt.u32.totalorder %s1955_s14, %s3244_s9 }
 0x1a0   : > { %p1957_p7 = pnand %p1956_p6, %p2094_p4 }
 0x1a1   : > { %p1962_p12 = por %p1961_p11, %p1960_p10 }
 0x1a2   : > { %p1958_p9 = pneg %p1957_p7 }
 0x1a3   : > { %p1964_p0 = por %p1963_p13, %p1962_p12 }
 0x1a5   : > { %p1965_p1 = pnand %p1964_p0, %p1958_p9 }
 0x1a7   : > { %1968 = shalt.err (!%p1965_p1)
}
 0x1a8   : > { %s2022_s25 = smov 128   ;;  %s2023_s7 = smov 8  }
 0x1a9   : > { %1871 = dma.vmem_to_hbm [thread:$0]  (%p2094_p4), %s3246_s27, 4096, %s3244_s9, %s3256_s21, %s2022_s25, %s2022_s25, %s2023_s7  }
 0x1aa PF: > { %p1877_p2 = scmp.ge.s32.totalorder %s2019_s23, 2  ;;  %s1510_s8 = sand.u32 1, %s1999_s18  }
 0x1ab   : > { %s1511_s10 = scalar_lea.sflag [#allocation3], %s1510_s8 }
 0x1ac   : > { %p1874_p3 = pnand %p1877_p2, %p2101_p8 }
 0x1ae   : > { %1994 = dma.done.wait (!%p1874_p3), %s1511_s10, 4096  }
 0x1af   : > { %1996 = vsyncadd (!%p1874_p3), %s1511_s10, 4294963200  ;;  %s18_s23 = sadd.s32 1, %s2019_s23   ;;  %s3430_s18 = smov %s2003_s19 }
 0x1b0   : > { %p15_p5 = scmp.ge.s32.totalorder %s18_s23, 4   ;;  %s3431_s19 = smov %s2007_s20 }
 0x1b1   : > { %s3432_s20 = smov %s2107_s6  ;;  %s3433_s21 = smov %s2015_s22 }
 0x1b2   : > { %s3434_s22 = smov %s3436_s26  ;;  %17 = sbr.rel (!%p15_p5) target bundleno = 4 (0x4), region = 78 }
 0x1b9   :  { %1516 = vsyncpa [#allocation3], 1 }
 0x1ba   :  { %1518 = vsyncpa [#allocation3 + $0x1], 1 }

</bundles_post_ra>
